<compile_context>
chip_gen: v5e
topology: v5e:2x2
jax: 0.10.0
libtpu: 0.0.40
codegen_flags: <defaults>
</compile_context>

<pallas_src>
import functools
import math

import jax
import jax.numpy as jnp
from jax.experimental import pallas as pl
from jax.experimental.pallas import tpu as pltpu


def _xattn_kernel(x_ref, enc_ref, wq_ref, bq_ref, wkv_ref, bkv_ref, wp_ref,
                  bp_ref, y_ref, att_ref, k_scr, v_scr, *, n_head, t_e_valid):
    # x_ref:   (tq, C)          enc_ref: (T_E_pad, C_E)   (batch dim squeezed)
    # wq_ref:  (C, C)  cdt      bq_ref:  (1, C)   f32     (1/sqrt(hs) folded in)
    # wkv_ref: (C_E, 2C) cdt    bkv_ref: (1, 2C)  f32     (key | value fused)
    # wp_ref:  (C, C)  cdt      bp_ref:  (1, C)   f32
    # y_ref:   (tq, C)          att_ref: (tq, T_E_pad)
    # k_scr/v_scr: (H, T_E_pad, hs) persistent VMEM scratch (filled at t == 0)
    f32 = jnp.float32
    H = n_head
    TQ, C = x_ref.shape
    TEp = enc_ref.shape[0]
    hs = C // H
    cdt = x_ref.dtype

    # ---- K/V projection: once per batch, persisted across the query tiles.
    # One fused lane-dense GEMM (N = 2C), f32 accumulation, head split at fill.
    @pl.when(pl.program_id(1) == 0)
    def _():
        kv = jnp.dot(enc_ref[...], wkv_ref[...],
                     preferred_element_type=f32) + bkv_ref[...]
        kv = kv.astype(cdt)                                       # (TEp, 2C)
        for h in range(H):                    # static split, fill-time only
            k_scr[h] = kv[:, h * hs:(h + 1) * hs]
            v_scr[h] = kv[:, C + h * hs:C + (h + 1) * hs]

    # ---- Q projection: lane-dense (tq, C) x (C, C) GEMM (scale pre-folded).
    q2 = jnp.dot(x_ref[...], wq_ref[...], preferred_element_type=f32) + bq_ref[...]
    q2 = q2.astype(cdt)

    if t_e_valid < TEp:                       # static: mask padded encoder keys
        key_mask = jax.lax.broadcasted_iota(jnp.int32, (1, TEp), 1) < t_e_valid
    else:
        key_mask = None

    # ---- Per-head attention (short static loop; score matmuls have N = TEp).
    att_sum = jnp.zeros((TQ, TEp), f32)
    y_heads = []
    for h in range(H):
        q_h = q2[:, h * hs:(h + 1) * hs]                           # (TQ, hs)
        s = jax.lax.dot_general(q_h, k_scr[h], (((1,), (1,)), ((), ())),
                                preferred_element_type=f32)        # (TQ, TEp)
        if key_mask is not None:
            s = jnp.where(key_mask, s, f32(-1e30))
        s = s - jnp.max(s, axis=-1, keepdims=True)
        p = jnp.exp(s)
        p = p * pl.reciprocal(jnp.sum(p, axis=-1, keepdims=True))  # exact
        att_sum = att_sum + p
        y_heads.append(jnp.dot(p.astype(cdt), v_scr[h],
                               preferred_element_type=f32).astype(cdt))

    # ---- Output projection fused with the head merge: one (tq,C)x(C,C) GEMM.
    y_cat = jnp.concatenate(y_heads, axis=-1)                      # (TQ, C)
    y = jnp.dot(y_cat, wp_ref[...], preferred_element_type=f32) + bp_ref[...]
    y_ref[...] = y.astype(y_ref.dtype)
    att_ref[...] = (att_sum * (1.0 / H)).astype(att_ref.dtype)


def _build_call(B, T, C, T_E_pad, C_E, n_head, t_e_valid, tq, x_dtype,
                vmem_limit_bytes, cost):
    H = n_head
    hs = C // H
    kernel = functools.partial(_xattn_kernel, n_head=H, t_e_valid=t_e_valid)
    n_t = pl.cdiv(T, tq)

    def const2d(shape):
        return pl.BlockSpec(shape, lambda b, t: (0, 0))

    return pl.pallas_call(
        kernel,
        out_shape=(
            jax.ShapeDtypeStruct((B, T, C), x_dtype),
            jax.ShapeDtypeStruct((B, T, T_E_pad), x_dtype),
        ),
        grid_spec=pltpu.PrefetchScalarGridSpec(
            num_scalar_prefetch=0,
            grid=(B, n_t),
            in_specs=[
                pl.BlockSpec((pl.Squeezed(), tq, C), lambda b, t: (b, t, 0)),         # x
                pl.BlockSpec((pl.Squeezed(), T_E_pad, C_E), lambda b, t: (b, 0, 0)),   # enc (index changes only with b -> fetched once per batch)
                const2d((C, C)), const2d((1, C)),            # query weight/bias (scaled)
                const2d((C_E, 2 * C)), const2d((1, 2 * C)),  # fused key|value weight/bias
                const2d((C, C)), const2d((1, C)),            # proj weight/bias
            ],
            out_specs=[
                pl.BlockSpec((pl.Squeezed(), tq, C), lambda b, t: (b, t, 0)),
                pl.BlockSpec((pl.Squeezed(), tq, T_E_pad), lambda b, t: (b, t, 0)),
            ],
            scratch_shapes=[
                pltpu.VMEM((H, T_E_pad, hs), x_dtype),       # K per head (persists over t)
                pltpu.VMEM((H, T_E_pad, hs), x_dtype),       # V per head
            ],
        ),
        compiler_params=pltpu.CompilerParams(
            dimension_semantics=("parallel", "arbitrary"),
            vmem_limit_bytes=int(vmem_limit_bytes),
        ),
        cost_estimate=cost,
    )


def _device_vmem_profile():
    """Per-generation VMEM budget / limit / max query-tile size."""
    kind = jax.devices()[0].device_kind.lower()
    if "v7" in kind or "7x" in kind:
        phys = 64 * 1024 * 1024          # v7x: 64 MiB per TensorCore
        tq_cap = 256
    else:
        phys = 128 * 1024 * 1024         # v5e / v6e: 128 MiB
        tq_cap = 512
    budget = int(phys * 0.55)            # target working set for tile sizing
    limit = int(phys * 0.78)             # scoped limit, below physical VMEM
    return budget, limit, tq_cap


def _choose_tq(T, B, C, C_E, T_E_pad, H, itemsize, budget_bytes, tq_cap):
    """Pick the query tile from the VMEM budget; keep >= 2 grid steps if possible."""
    hs = C // H
    hs_lanes = ((hs + 127) // 128) * 128          # scratch lane padding

    def est(tq):
        f32 = 4
        blocks = 2 * (tq * C * itemsize           # x  (double-buffered)
                      + tq * C * itemsize         # y
                      + tq * T_E_pad * itemsize   # att
                      + T_E_pad * C_E * itemsize) # enc
        weights = 2 * ((2 * C * C + 2 * C * C_E) * itemsize + 4 * C * f32)
        scratch = 2 * H * T_E_pad * hs_lanes * itemsize
        live = (3 * tq * T_E_pad * f32            # scores, probs, att accumulator
                + 2 * T_E_pad * C * f32           # kv (t == 0)
                + 3 * tq * C * f32)               # q2, y_cat, y
        return blocks + weights + scratch + live

    def shrink(tq):
        return max(8, ((tq // 2) // 8) * 8)

    tq = T if T <= tq_cap else (tq_cap // 8) * 8
    while tq > 8 and est(tq) > budget_bytes and shrink(tq) < tq:
        tq = shrink(tq)
    # Keep both v7x TensorCores busy: at least 2 (parallel) grid steps when we can.
    while B * ((T + tq - 1) // tq) < 2 and tq > 8 and shrink(tq) < tq:
        tq = shrink(tq)
    return tq


def text_to_series_cross_attention(x, encoder_output, params, n_head):
    """Pallas implementation of TextToSeriesCrossAttention.forward (mask unused)."""
    B, T, C = x.shape
    B2, T_E, C_E = encoder_output.shape
    assert B == B2 and C % n_head == 0
    H = n_head
    hs = C // H
    scale = 1.0 / math.sqrt(hs)
    cdt = x.dtype
    itemsize = jnp.dtype(cdt).itemsize

    wq, bq = params["query"]   # (C,   C), (1, C)   ((in, out) layout)
    wk, bk = params["key"]     # (C_E, C), (1, C)
    wv, bv = params["value"]   # (C_E, C), (1, C)
    wp, bp = params["proj"]    # (C,   C), (1, C)

    # Host-side prep: fold 1/sqrt(hs) into the query weights/bias, fuse K and V
    # into one (C_E, 2C) RHS, cast MXU operands to the input dtype, biases in f32.
    wq2 = (wq * scale).astype(cdt)
    bq2 = (bq * scale).reshape(1, C).astype(jnp.float32)
    wkv2 = jnp.concatenate([wk, wv], axis=1).astype(cdt)                 # (C_E, 2C)
    bkv2 = jnp.concatenate([bk, bv], axis=1).reshape(1, 2 * C).astype(jnp.float32)
    wp2 = wp.astype(cdt)
    bp2 = bp.reshape(1, C).astype(jnp.float32)

    # Pad encoder length to a lane-dense multiple of 128; mask inside the kernel.
    T_E_pad = ((T_E + 127) // 128) * 128
    enc_p = encoder_output
    if T_E_pad != T_E:
        enc_p = jnp.pad(encoder_output, ((0, 0), (0, T_E_pad - T_E), (0, 0)))
    enc_p = enc_p.astype(cdt)
    x = x.astype(cdt)

    budget, vmem_limit, tq_cap = _device_vmem_profile()
    tq = _choose_tq(T, B, C, C_E, T_E_pad, H, itemsize, budget, tq_cap)

    flops = 2 * B * (T_E_pad * C_E * 2 * C        # fused K/V projection (per batch)
                     + 2 * T * C * C              # Q + output projections
                     + 2 * T * T_E_pad * C)       # scores + att @ V
    transcendentals = B * H * T * T_E_pad
    bytes_acc = (x.size * itemsize + enc_p.size * itemsize
                 + sum(int(a.size) * a.dtype.itemsize
                       for a in (wq2, bq2, wkv2, bkv2, wp2, bp2))
                 + B * T * C * itemsize + B * T * T_E_pad * itemsize)
    cost = pl.CostEstimate(flops=int(flops), transcendentals=int(transcendentals),
                           bytes_accessed=int(bytes_acc))

    call = _build_call(B, T, C, T_E_pad, C_E, H, T_E, tq, cdt, vmem_limit, cost)
    y, att_p = call(x, enc_p, wq2, bq2, wkv2, bkv2, wp2, bp2)
    return y, att_p[:, :, :T_E]


def _reference(x, enc, params, n_head):
    """Pure-JAX reference mirroring the PyTorch forward."""
    B, T, C = x.shape
    _, T_E, _ = enc.shape
    hs = C // n_head
    wq, bq = params["query"]; wk, bk = params["key"]
    wv, bv = params["value"]; wp, bp = params["proj"]
    q = x @ wq + bq[0]
    k = enc @ wk + bk[0]
    v = enc @ wv + bv[0]
    q = q.reshape(B, T, n_head, hs).transpose(0, 2, 1, 3)
    k = k.reshape(B, T_E, n_head, hs).transpose(0, 2, 1, 3)
    v = v.reshape(B, T_E, n_head, hs).transpose(0, 2, 1, 3)
    att = (q @ jnp.swapaxes(k, -2, -1)) * (1.0 / math.sqrt(hs))
    att = jax.nn.softmax(att, axis=-1)
    y = att @ v
    y = y.transpose(0, 2, 1, 3).reshape(B, T, C)
    y = y @ wp + bp[0]
    return y, att.mean(axis=1)


def _init_params(key, n_embd, condition_embd):
    """Deterministic param init (transposed (in, out) Linear layout)."""
    ks = jax.random.split(key, 8)
    def lin(kw, kb, in_f, out_f):
        bound = 1.0 / math.sqrt(in_f)
        w = jax.random.uniform(kw, (in_f, out_f), jnp.float32, -bound, bound)
        b = jax.random.uniform(kb, (1, out_f), jnp.float32, -bound, bound)
        return w, b
    return {
        "key":   lin(ks[0], ks[1], condition_embd, n_embd),
        "query": lin(ks[2], ks[3], n_embd, n_embd),
        "value": lin(ks[4], ks[5], condition_embd, n_embd),
        "proj":  lin(ks[6], ks[7], n_embd, n_embd),
    }


if __name__ == "__main__":
    B, T, T_E = 2, 8, 8
    n_embd, condition_embd, n_head = 32, 16, 4

    root = jax.random.PRNGKey(0)
    k_x, k_e, k_p = jax.random.split(root, 3)
    x = jax.random.normal(k_x, (B, T, n_embd), jnp.float32)
    enc = jax.random.normal(k_e, (B, T_E, condition_embd), jnp.float32)
    params = _init_params(k_p, n_embd, condition_embd)

    y, att = text_to_series_cross_attention(x, enc, params, n_head)
    jax.block_until_ready((y, att))

    y_ref, att_ref = _reference(x, enc, params, n_head)
    assert jnp.allclose(y, y_ref, atol=1e-4, rtol=1e-4), \
        float(jnp.max(jnp.abs(y - y_ref)))
    assert jnp.allclose(att, att_ref, atol=1e-4, rtol=1e-4), \
        float(jnp.max(jnp.abs(att - att_ref)))

    print("KERNEL_OK")
</pallas_src>

<mosaic_0001>
module attributes {stable_mosaic.version = 11 : i64} {
  func.func @_xattn_kernel(%arg0: i32, %arg1: i32, %arg2: memref<1x8x32xf32, #tpu.memory_space<vmem>>, %arg3: memref<1x128x16xf32, #tpu.memory_space<vmem>>, %arg4: memref<32x32xf32, #tpu.memory_space<vmem>>, %arg5: memref<1x32xf32, #tpu.memory_space<vmem>>, %arg6: memref<16x64xf32, #tpu.memory_space<vmem>>, %arg7: memref<1x64xf32, #tpu.memory_space<vmem>>, %arg8: memref<32x32xf32, #tpu.memory_space<vmem>>, %arg9: memref<1x32xf32, #tpu.memory_space<vmem>>, %arg10: memref<1x8x32xf32, #tpu.memory_space<vmem>>, %arg11: memref<1x8x128xf32, #tpu.memory_space<vmem>>, %arg12: memref<4x128x8xf32, #tpu.memory_space<vmem>>, %arg13: memref<4x128x8xf32, #tpu.memory_space<vmem>>) attributes {dimension_semantics = [#tpu.dimension_semantics<parallel>, #tpu.dimension_semantics<arbitrary>], iteration_bounds = array<i64: 2, 1>, scalar_prefetch = 0 : i64, scratch_operands = 2 : i64, tpu.core_type = #tpu.core_type<tc>, window_params = [{transform_indices = @transform_0, window_bounds = array<i64: 1, 8, 32>}, {transform_indices = @transform_1, window_bounds = array<i64: 1, 128, 16>}, {pipeline_mode = #tpu.pipeline_mode<synchronous>, transform_indices = @transform_2, window_bounds = array<i64: 32, 32>}, {pipeline_mode = #tpu.pipeline_mode<synchronous>, transform_indices = @transform_3, window_bounds = array<i64: 1, 32>}, {pipeline_mode = #tpu.pipeline_mode<synchronous>, transform_indices = @transform_4, window_bounds = array<i64: 16, 64>}, {pipeline_mode = #tpu.pipeline_mode<synchronous>, transform_indices = @transform_5, window_bounds = array<i64: 1, 64>}, {pipeline_mode = #tpu.pipeline_mode<synchronous>, transform_indices = @transform_6, window_bounds = array<i64: 32, 32>}, {pipeline_mode = #tpu.pipeline_mode<synchronous>, transform_indices = @transform_7, window_bounds = array<i64: 1, 32>}, {transform_indices = @transform_8, window_bounds = array<i64: 1, 8, 32>}, {transform_indices = @transform_9, window_bounds = array<i64: 1, 8, 128>}]} {
    %c0_i32 = arith.constant 0 : i32
    %0 = arith.cmpi eq, %arg1, %c0_i32 : i32
    %1 = arith.extui %0 : i1 to i32
    %c0_i32_0 = arith.constant 0 : i32
    %2 = arith.cmpi ne, %1, %c0_i32_0 : i32
    scf.if %2 {
      %c0_61 = arith.constant 0 : index
      %c0_62 = arith.constant 0 : index
      %c0_63 = arith.constant 0 : index
      %116 = vector.load %arg3[%c0_61, %c0_62, %c0_63] : memref<1x128x16xf32, #tpu.memory_space<vmem>>, vector<1x128x16xf32>
      %117 = vector.shape_cast %116 : vector<1x128x16xf32> to vector<128x16xf32>
      %c0_64 = arith.constant 0 : index
      %c0_65 = arith.constant 0 : index
      %118 = vector.load %arg6[%c0_64, %c0_65] : memref<16x64xf32, #tpu.memory_space<vmem>>, vector<16x64xf32>
      %cst_66 = arith.constant dense<0.000000e+00> : vector<128x64xf32>
      %119 = tpu.matmul %117, %118, %cst_66 {dimension_numbers = #tpu.dot_dimension_numbers<[1], [0], [0], [1], [0, 0, 1, 1], [], []>} : vector<128x16xf32>, vector<16x64xf32>, vector<128x64xf32> -> vector<128x64xf32>
      %c0_67 = arith.constant 0 : index
      %c0_68 = arith.constant 0 : index
      %120 = vector.load %arg7[%c0_67, %c0_68] : memref<1x64xf32, #tpu.memory_space<vmem>>, vector<1x64xf32>
      %121 = vector.broadcast %120 : vector<1x64xf32> to vector<128x64xf32>
      %122 = arith.addf %119, %121 : vector<128x64xf32>
      %123 = vector.extract_strided_slice %122 {offsets = [0, 0], sizes = [128, 8], strides = [1, 1]} : vector<128x64xf32> to vector<128x8xf32>
      %c0_69 = arith.constant 0 : index
      %c0_70 = arith.constant 0 : index
      %c0_71 = arith.constant 0 : index
      %124 = vector.load %arg12[%c0_69, %c0_70, %c0_71] : memref<4x128x8xf32, #tpu.memory_space<vmem>>, vector<1x128x8xf32>
      %125 = vector.shape_cast %124 : vector<1x128x8xf32> to vector<128x8xf32>
      %126 = vector.shape_cast %123 : vector<128x8xf32> to vector<1x128x8xf32>
      tpu.vector_store %arg12[%c0_69, %c0_70, %c0_71], %126 {strides = array<i32>} : memref<4x128x8xf32, #tpu.memory_space<vmem>>, vector<1x128x8xf32>,
      %127 = vector.extract_strided_slice %122 {offsets = [0, 32], sizes = [128, 8], strides = [1, 1]} : vector<128x64xf32> to vector<128x8xf32>
      %c0_72 = arith.constant 0 : index
      %c0_73 = arith.constant 0 : index
      %c0_74 = arith.constant 0 : index
      %128 = vector.load %arg13[%c0_72, %c0_73, %c0_74] : memref<4x128x8xf32, #tpu.memory_space<vmem>>, vector<1x128x8xf32>
      %129 = vector.shape_cast %128 : vector<1x128x8xf32> to vector<128x8xf32>
      %130 = vector.shape_cast %127 : vector<128x8xf32> to vector<1x128x8xf32>
      tpu.vector_store %arg13[%c0_72, %c0_73, %c0_74], %130 {strides = array<i32>} : memref<4x128x8xf32, #tpu.memory_space<vmem>>, vector<1x128x8xf32>,
      %131 = vector.extract_strided_slice %122 {offsets = [0, 8], sizes = [128, 8], strides = [1, 1]} : vector<128x64xf32> to vector<128x8xf32>
      %c1_75 = arith.constant 1 : index
      %c0_76 = arith.constant 0 : index
      %c0_77 = arith.constant 0 : index
      %132 = vector.load %arg12[%c1_75, %c0_76, %c0_77] : memref<4x128x8xf32, #tpu.memory_space<vmem>>, vector<1x128x8xf32>
      %133 = vector.shape_cast %132 : vector<1x128x8xf32> to vector<128x8xf32>
      %134 = vector.shape_cast %131 : vector<128x8xf32> to vector<1x128x8xf32>
      tpu.vector_store %arg12[%c1_75, %c0_76, %c0_77], %134 {strides = array<i32>} : memref<4x128x8xf32, #tpu.memory_space<vmem>>, vector<1x128x8xf32>,
      %135 = vector.extract_strided_slice %122 {offsets = [0, 40], sizes = [128, 8], strides = [1, 1]} : vector<128x64xf32> to vector<128x8xf32>
      %c1_78 = arith.constant 1 : index
      %c0_79 = arith.constant 0 : index
      %c0_80 = arith.constant 0 : index
      %136 = vector.load %arg13[%c1_78, %c0_79, %c0_80] : memref<4x128x8xf32, #tpu.memory_space<vmem>>, vector<1x128x8xf32>
      %137 = vector.shape_cast %136 : vector<1x128x8xf32> to vector<128x8xf32>
      %138 = vector.shape_cast %135 : vector<128x8xf32> to vector<1x128x8xf32>
      tpu.vector_store %arg13[%c1_78, %c0_79, %c0_80], %138 {strides = array<i32>} : memref<4x128x8xf32, #tpu.memory_space<vmem>>, vector<1x128x8xf32>,
      %139 = vector.extract_strided_slice %122 {offsets = [0, 16], sizes = [128, 8], strides = [1, 1]} : vector<128x64xf32> to vector<128x8xf32>
      %c2_81 = arith.constant 2 : index
      %c0_82 = arith.constant 0 : index
      %c0_83 = arith.constant 0 : index
      %140 = vector.load %arg12[%c2_81, %c0_82, %c0_83] : memref<4x128x8xf32, #tpu.memory_space<vmem>>, vector<1x128x8xf32>
      %141 = vector.shape_cast %140 : vector<1x128x8xf32> to vector<128x8xf32>
      %142 = vector.shape_cast %139 : vector<128x8xf32> to vector<1x128x8xf32>
      tpu.vector_store %arg12[%c2_81, %c0_82, %c0_83], %142 {strides = array<i32>} : memref<4x128x8xf32, #tpu.memory_space<vmem>>, vector<1x128x8xf32>,
      %143 = vector.extract_strided_slice %122 {offsets = [0, 48], sizes = [128, 8], strides = [1, 1]} : vector<128x64xf32> to vector<128x8xf32>
      %c2_84 = arith.constant 2 : index
      %c0_85 = arith.constant 0 : index
      %c0_86 = arith.constant 0 : index
      %144 = vector.load %arg13[%c2_84, %c0_85, %c0_86] : memref<4x128x8xf32, #tpu.memory_space<vmem>>, vector<1x128x8xf32>
      %145 = vector.shape_cast %144 : vector<1x128x8xf32> to vector<128x8xf32>
      %146 = vector.shape_cast %143 : vector<128x8xf32> to vector<1x128x8xf32>
      tpu.vector_store %arg13[%c2_84, %c0_85, %c0_86], %146 {strides = array<i32>} : memref<4x128x8xf32, #tpu.memory_space<vmem>>, vector<1x128x8xf32>,
      %147 = vector.extract_strided_slice %122 {offsets = [0, 24], sizes = [128, 8], strides = [1, 1]} : vector<128x64xf32> to vector<128x8xf32>
      %c3_87 = arith.constant 3 : index
      %c0_88 = arith.constant 0 : index
      %c0_89 = arith.constant 0 : index
      %148 = vector.load %arg12[%c3_87, %c0_88, %c0_89] : memref<4x128x8xf32, #tpu.memory_space<vmem>>, vector<1x128x8xf32>
      %149 = vector.shape_cast %148 : vector<1x128x8xf32> to vector<128x8xf32>
      %150 = vector.shape_cast %147 : vector<128x8xf32> to vector<1x128x8xf32>
      tpu.vector_store %arg12[%c3_87, %c0_88, %c0_89], %150 {strides = array<i32>} : memref<4x128x8xf32, #tpu.memory_space<vmem>>, vector<1x128x8xf32>,
      %151 = vector.extract_strided_slice %122 {offsets = [0, 56], sizes = [128, 8], strides = [1, 1]} : vector<128x64xf32> to vector<128x8xf32>
      %c3_90 = arith.constant 3 : index
      %c0_91 = arith.constant 0 : index
      %c0_92 = arith.constant 0 : index
      %152 = vector.load %arg13[%c3_90, %c0_91, %c0_92] : memref<4x128x8xf32, #tpu.memory_space<vmem>>, vector<1x128x8xf32>
      %153 = vector.shape_cast %152 : vector<1x128x8xf32> to vector<128x8xf32>
      %154 = vector.shape_cast %151 : vector<128x8xf32> to vector<1x128x8xf32>
      tpu.vector_store %arg13[%c3_90, %c0_91, %c0_92], %154 {strides = array<i32>} : memref<4x128x8xf32, #tpu.memory_space<vmem>>, vector<1x128x8xf32>,
    } else {
    }
    %c0 = arith.constant 0 : index
    %c0_1 = arith.constant 0 : index
    %c0_2 = arith.constant 0 : index
    %3 = vector.load %arg2[%c0, %c0_1, %c0_2] : memref<1x8x32xf32, #tpu.memory_space<vmem>>, vector<1x8x32xf32>
    %4 = vector.shape_cast %3 : vector<1x8x32xf32> to vector<8x32xf32>
    %c0_3 = arith.constant 0 : index
    %c0_4 = arith.constant 0 : index
    %5 = vector.load %arg4[%c0_3, %c0_4] : memref<32x32xf32, #tpu.memory_space<vmem>>, vector<32x32xf32>
    %cst = arith.constant dense<0.000000e+00> : vector<8x32xf32>
    %6 = tpu.matmul %4, %5, %cst {dimension_numbers = #tpu.dot_dimension_numbers<[1], [0], [0], [1], [0, 0, 1, 1], [], []>} : vector<8x32xf32>, vector<32x32xf32>, vector<8x32xf32> -> vector<8x32xf32>
    %c0_5 = arith.constant 0 : index
    %c0_6 = arith.constant 0 : index
    %7 = vector.load %arg5[%c0_5, %c0_6] : memref<1x32xf32, #tpu.memory_space<vmem>>, vector<1x32xf32>
    %8 = vector.broadcast %7 : vector<1x32xf32> to vector<8x32xf32>
    %9 = arith.addf %6, %8 : vector<8x32xf32>
    %10 = tpu.iota {dimensions = array<i32: 1>} : vector<1x128xi32>
    %c8_i32 = arith.constant 8 : i32
    %11 = vector.broadcast %c8_i32 : i32 to vector<1x128xi32>
    %12 = arith.cmpi slt, %10, %11 : vector<1x128xi32>
    %cst_7 = arith.constant 0.000000e+00 : f32
    %13 = vector.broadcast %cst_7 : f32 to vector<8x128xf32>
    %14 = vector.extract_strided_slice %9 {offsets = [0, 0], sizes = [8, 8], strides = [1, 1]} : vector<8x32xf32> to vector<8x8xf32>
    %c0_8 = arith.constant 0 : index
    %c0_9 = arith.constant 0 : index
    %c0_10 = arith.constant 0 : index
    %15 = vector.load %arg12[%c0_8, %c0_9, %c0_10] : memref<4x128x8xf32, #tpu.memory_space<vmem>>, vector<1x128x8xf32>
    %16 = vector.shape_cast %15 : vector<1x128x8xf32> to vector<128x8xf32>
    %cst_11 = arith.constant dense<0.000000e+00> : vector<8x128xf32>
    %17 = tpu.matmul %14, %16, %cst_11 {dimension_numbers = #tpu.dot_dimension_numbers<[1], [1], [0], [0], [0, 0, 1, 0], [], []>} : vector<8x8xf32>, vector<128x8xf32>, vector<8x128xf32> -> vector<8x128xf32>
    %cst_12 = arith.constant -1.000000e+30 : f32
    %18 = vector.shape_cast %12 : vector<1x128xi1> to vector<1x128xi1>
    %19 = vector.broadcast %18 : vector<1x128xi1> to vector<8x128xi1>
    %20 = vector.broadcast %cst_12 : f32 to vector<8x128xf32>
    %21 = arith.select %19, %17, %20 : vector<8x128xi1>, vector<8x128xf32>
    %cst_13 = arith.constant dense<0xFF800000> : vector<8xf32>
    %22 = vector.multi_reduction <maximumf>, %21, %cst_13 [1] : vector<8x128xf32> to vector<8xf32>
    %23 = vector.shape_cast %22 : vector<8xf32> to vector<8x1xf32>
    %24 = vector.broadcast %23 : vector<8x1xf32> to vector<8x128xf32>
    %25 = arith.subf %21, %24 : vector<8x128xf32>
    %26 = math.exp %25 : vector<8x128xf32>
    %cst_14 = arith.constant dense<0.000000e+00> : vector<8xf32>
    %27 = vector.multi_reduction <add>, %26, %cst_14 [1] : vector<8x128xf32> to vector<8xf32>
    %28 = vector.shape_cast %27 : vector<8xf32> to vector<8x1xf32>
    %29 = tpu.reciprocal %28 : vector<8x1xf32> -> vector<8x1xf32>
    %30 = vector.broadcast %29 : vector<8x1xf32> to vector<8x128xf32>
    %31 = arith.mulf %26, %30 : vector<8x128xf32>
    %32 = arith.addf %13, %31 : vector<8x128xf32>
    %c0_15 = arith.constant 0 : index
    %c0_16 = arith.constant 0 : index
    %c0_17 = arith.constant 0 : index
    %33 = vector.load %arg13[%c0_15, %c0_16, %c0_17] : memref<4x128x8xf32, #tpu.memory_space<vmem>>, vector<1x128x8xf32>
    %34 = vector.shape_cast %33 : vector<1x128x8xf32> to vector<128x8xf32>
    %cst_18 = arith.constant dense<0.000000e+00> : vector<8x8xf32>
    %35 = tpu.matmul %31, %34, %cst_18 {dimension_numbers = #tpu.dot_dimension_numbers<[1], [0], [0], [1], [0, 0, 1, 1], [], []>} : vector<8x128xf32>, vector<128x8xf32>, vector<8x8xf32> -> vector<8x8xf32>
    %36 = vector.extract_strided_slice %9 {offsets = [0, 8], sizes = [8, 8], strides = [1, 1]} : vector<8x32xf32> to vector<8x8xf32>
    %c1 = arith.constant 1 : index
    %c0_19 = arith.constant 0 : index
    %c0_20 = arith.constant 0 : index
    %37 = vector.load %arg12[%c1, %c0_19, %c0_20] : memref<4x128x8xf32, #tpu.memory_space<vmem>>, vector<1x128x8xf32>
    %38 = vector.shape_cast %37 : vector<1x128x8xf32> to vector<128x8xf32>
    %cst_21 = arith.constant dense<0.000000e+00> : vector<8x128xf32>
    %39 = tpu.matmul %36, %38, %cst_21 {dimension_numbers = #tpu.dot_dimension_numbers<[1], [1], [0], [0], [0, 0, 1, 0], [], []>} : vector<8x8xf32>, vector<128x8xf32>, vector<8x128xf32> -> vector<8x128xf32>
    %cst_22 = arith.constant -1.000000e+30 : f32
    %40 = vector.shape_cast %12 : vector<1x128xi1> to vector<1x128xi1>
    %41 = vector.broadcast %40 : vector<1x128xi1> to vector<8x128xi1>
    %42 = vector.broadcast %cst_22 : f32 to vector<8x128xf32>
    %43 = arith.select %41, %39, %42 : vector<8x128xi1>, vector<8x128xf32>
    %cst_23 = arith.constant dense<0xFF800000> : vector<8xf32>
    %44 = vector.multi_reduction <maximumf>, %43, %cst_23 [1] : vector<8x128xf32> to vector<8xf32>
    %45 = vector.shape_cast %44 : vector<8xf32> to vector<8x1xf32>
    %46 = vector.broadcast %45 : vector<8x1xf32> to vector<8x128xf32>
    %47 = arith.subf %43, %46 : vector<8x128xf32>
    %48 = math.exp %47 : vector<8x128xf32>
    %cst_24 = arith.constant dense<0.000000e+00> : vector<8xf32>
    %49 = vector.multi_reduction <add>, %48, %cst_24 [1] : vector<8x128xf32> to vector<8xf32>
    %50 = vector.shape_cast %49 : vector<8xf32> to vector<8x1xf32>
    %51 = tpu.reciprocal %50 : vector<8x1xf32> -> vector<8x1xf32>
    %52 = vector.broadcast %51 : vector<8x1xf32> to vector<8x128xf32>
    %53 = arith.mulf %48, %52 : vector<8x128xf32>
    %54 = arith.addf %32, %53 : vector<8x128xf32>
    %c1_25 = arith.constant 1 : index
    %c0_26 = arith.constant 0 : index
    %c0_27 = arith.constant 0 : index
    %55 = vector.load %arg13[%c1_25, %c0_26, %c0_27] : memref<4x128x8xf32, #tpu.memory_space<vmem>>, vector<1x128x8xf32>
    %56 = vector.shape_cast %55 : vector<1x128x8xf32> to vector<128x8xf32>
    %cst_28 = arith.constant dense<0.000000e+00> : vector<8x8xf32>
    %57 = tpu.matmul %53, %56, %cst_28 {dimension_numbers = #tpu.dot_dimension_numbers<[1], [0], [0], [1], [0, 0, 1, 1], [], []>} : vector<8x128xf32>, vector<128x8xf32>, vector<8x8xf32> -> vector<8x8xf32>
    %58 = vector.extract_strided_slice %9 {offsets = [0, 16], sizes = [8, 8], strides = [1, 1]} : vector<8x32xf32> to vector<8x8xf32>
    %c2 = arith.constant 2 : index
    %c0_29 = arith.constant 0 : index
    %c0_30 = arith.constant 0 : index
    %59 = vector.load %arg12[%c2, %c0_29, %c0_30] : memref<4x128x8xf32, #tpu.memory_space<vmem>>, vector<1x128x8xf32>
    %60 = vector.shape_cast %59 : vector<1x128x8xf32> to vector<128x8xf32>
    %cst_31 = arith.constant dense<0.000000e+00> : vector<8x128xf32>
    %61 = tpu.matmul %58, %60, %cst_31 {dimension_numbers = #tpu.dot_dimension_numbers<[1], [1], [0], [0], [0, 0, 1, 0], [], []>} : vector<8x8xf32>, vector<128x8xf32>, vector<8x128xf32> -> vector<8x128xf32>
    %cst_32 = arith.constant -1.000000e+30 : f32
    %62 = vector.shape_cast %12 : vector<1x128xi1> to vector<1x128xi1>
    %63 = vector.broadcast %62 : vector<1x128xi1> to vector<8x128xi1>
    %64 = vector.broadcast %cst_32 : f32 to vector<8x128xf32>
    %65 = arith.select %63, %61, %64 : vector<8x128xi1>, vector<8x128xf32>
    %cst_33 = arith.constant dense<0xFF800000> : vector<8xf32>
    %66 = vector.multi_reduction <maximumf>, %65, %cst_33 [1] : vector<8x128xf32> to vector<8xf32>
    %67 = vector.shape_cast %66 : vector<8xf32> to vector<8x1xf32>
    %68 = vector.broadcast %67 : vector<8x1xf32> to vector<8x128xf32>
    %69 = arith.subf %65, %68 : vector<8x128xf32>
    %70 = math.exp %69 : vector<8x128xf32>
    %cst_34 = arith.constant dense<0.000000e+00> : vector<8xf32>
    %71 = vector.multi_reduction <add>, %70, %cst_34 [1] : vector<8x128xf32> to vector<8xf32>
    %72 = vector.shape_cast %71 : vector<8xf32> to vector<8x1xf32>
    %73 = tpu.reciprocal %72 : vector<8x1xf32> -> vector<8x1xf32>
    %74 = vector.broadcast %73 : vector<8x1xf32> to vector<8x128xf32>
    %75 = arith.mulf %70, %74 : vector<8x128xf32>
    %76 = arith.addf %54, %75 : vector<8x128xf32>
    %c2_35 = arith.constant 2 : index
    %c0_36 = arith.constant 0 : index
    %c0_37 = arith.constant 0 : index
    %77 = vector.load %arg13[%c2_35, %c0_36, %c0_37] : memref<4x128x8xf32, #tpu.memory_space<vmem>>, vector<1x128x8xf32>
    %78 = vector.shape_cast %77 : vector<1x128x8xf32> to vector<128x8xf32>
    %cst_38 = arith.constant dense<0.000000e+00> : vector<8x8xf32>
    %79 = tpu.matmul %75, %78, %cst_38 {dimension_numbers = #tpu.dot_dimension_numbers<[1], [0], [0], [1], [0, 0, 1, 1], [], []>} : vector<8x128xf32>, vector<128x8xf32>, vector<8x8xf32> -> vector<8x8xf32>
    %80 = vector.extract_strided_slice %9 {offsets = [0, 24], sizes = [8, 8], strides = [1, 1]} : vector<8x32xf32> to vector<8x8xf32>
    %c3 = arith.constant 3 : index
    %c0_39 = arith.constant 0 : index
    %c0_40 = arith.constant 0 : index
    %81 = vector.load %arg12[%c3, %c0_39, %c0_40] : memref<4x128x8xf32, #tpu.memory_space<vmem>>, vector<1x128x8xf32>
    %82 = vector.shape_cast %81 : vector<1x128x8xf32> to vector<128x8xf32>
    %cst_41 = arith.constant dense<0.000000e+00> : vector<8x128xf32>
    %83 = tpu.matmul %80, %82, %cst_41 {dimension_numbers = #tpu.dot_dimension_numbers<[1], [1], [0], [0], [0, 0, 1, 0], [], []>} : vector<8x8xf32>, vector<128x8xf32>, vector<8x128xf32> -> vector<8x128xf32>
    %cst_42 = arith.constant -1.000000e+30 : f32
    %84 = vector.shape_cast %12 : vector<1x128xi1> to vector<1x128xi1>
    %85 = vector.broadcast %84 : vector<1x128xi1> to vector<8x128xi1>
    %86 = vector.broadcast %cst_42 : f32 to vector<8x128xf32>
    %87 = arith.select %85, %83, %86 : vector<8x128xi1>, vector<8x128xf32>
    %cst_43 = arith.constant dense<0xFF800000> : vector<8xf32>
    %88 = vector.multi_reduction <maximumf>, %87, %cst_43 [1] : vector<8x128xf32> to vector<8xf32>
    %89 = vector.shape_cast %88 : vector<8xf32> to vector<8x1xf32>
    %90 = vector.broadcast %89 : vector<8x1xf32> to vector<8x128xf32>
    %91 = arith.subf %87, %90 : vector<8x128xf32>
    %92 = math.exp %91 : vector<8x128xf32>
    %cst_44 = arith.constant dense<0.000000e+00> : vector<8xf32>
    %93 = vector.multi_reduction <add>, %92, %cst_44 [1] : vector<8x128xf32> to vector<8xf32>
    %94 = vector.shape_cast %93 : vector<8xf32> to vector<8x1xf32>
    %95 = tpu.reciprocal %94 : vector<8x1xf32> -> vector<8x1xf32>
    %96 = vector.broadcast %95 : vector<8x1xf32> to vector<8x128xf32>
    %97 = arith.mulf %92, %96 : vector<8x128xf32>
    %98 = arith.addf %76, %97 : vector<8x128xf32>
    %c3_45 = arith.constant 3 : index
    %c0_46 = arith.constant 0 : index
    %c0_47 = arith.constant 0 : index
    %99 = vector.load %arg13[%c3_45, %c0_46, %c0_47] : memref<4x128x8xf32, #tpu.memory_space<vmem>>, vector<1x128x8xf32>
    %100 = vector.shape_cast %99 : vector<1x128x8xf32> to vector<128x8xf32>
    %cst_48 = arith.constant dense<0.000000e+00> : vector<8x8xf32>
    %101 = tpu.matmul %97, %100, %cst_48 {dimension_numbers = #tpu.dot_dimension_numbers<[1], [0], [0], [1], [0, 0, 1, 1], [], []>} : vector<8x128xf32>, vector<128x8xf32>, vector<8x8xf32> -> vector<8x8xf32>
    %102 = tpu.concatenate %35, %57, %79, %101 in 1 : vector<8x8xf32>, vector<8x8xf32>, vector<8x8xf32>, vector<8x8xf32> -> vector<8x32xf32>
    %c0_49 = arith.constant 0 : index
    %c0_50 = arith.constant 0 : index
    %103 = vector.load %arg8[%c0_49, %c0_50] : memref<32x32xf32, #tpu.memory_space<vmem>>, vector<32x32xf32>
    %cst_51 = arith.constant dense<0.000000e+00> : vector<8x32xf32>
    %104 = tpu.matmul %102, %103, %cst_51 {dimension_numbers = #tpu.dot_dimension_numbers<[1], [0], [0], [1], [0, 0, 1, 1], [], []>} : vector<8x32xf32>, vector<32x32xf32>, vector<8x32xf32> -> vector<8x32xf32>
    %c0_52 = arith.constant 0 : index
    %c0_53 = arith.constant 0 : index
    %105 = vector.load %arg9[%c0_52, %c0_53] : memref<1x32xf32, #tpu.memory_space<vmem>>, vector<1x32xf32>
    %106 = vector.broadcast %105 : vector<1x32xf32> to vector<8x32xf32>
    %107 = arith.addf %104, %106 : vector<8x32xf32>
    %c0_54 = arith.constant 0 : index
    %c0_55 = arith.constant 0 : index
    %c0_56 = arith.constant 0 : index
    %108 = vector.load %arg10[%c0_54, %c0_55, %c0_56] : memref<1x8x32xf32, #tpu.memory_space<vmem>>, vector<1x8x32xf32>
    %109 = vector.shape_cast %108 : vector<1x8x32xf32> to vector<8x32xf32>
    %110 = vector.shape_cast %107 : vector<8x32xf32> to vector<1x8x32xf32>
    tpu.vector_store %arg10[%c0_54, %c0_55, %c0_56], %110 {strides = array<i32>} : memref<1x8x32xf32, #tpu.memory_space<vmem>>, vector<1x8x32xf32>,
    %cst_57 = arith.constant 2.500000e-01 : f32
    %111 = vector.broadcast %cst_57 : f32 to vector<8x128xf32>
    %112 = arith.mulf %98, %111 : vector<8x128xf32>
    %c0_58 = arith.constant 0 : index
    %c0_59 = arith.constant 0 : index
    %c0_60 = arith.constant 0 : index
    %113 = vector.load %arg11[%c0_58, %c0_59, %c0_60] : memref<1x8x128xf32, #tpu.memory_space<vmem>>, vector<1x8x128xf32>
    %114 = vector.shape_cast %113 : vector<1x8x128xf32> to vector<8x128xf32>
    %115 = vector.shape_cast %112 : vector<8x128xf32> to vector<1x8x128xf32>
    tpu.vector_store %arg11[%c0_58, %c0_59, %c0_60], %115 {strides = array<i32>} : memref<1x8x128xf32, #tpu.memory_space<vmem>>, vector<1x8x128xf32>,
    return
  }
  func.func @transform_0(%arg0: i32, %arg1: i32) -> (i32, i32, i32) {
    %c0_i32 = arith.constant 0 : i32
    %c0_i32_0 = arith.constant 0 : i32
    return %arg0, %arg1, %c0_i32 : i32, i32, i32
  }
  func.func @transform_1(%arg0: i32, %arg1: i32) -> (i32, i32, i32) {
    %c0_i32 = arith.constant 0 : i32
    %c0_i32_0 = arith.constant 0 : i32
    %c0_i32_1 = arith.constant 0 : i32
    return %arg0, %c0_i32, %c0_i32_0 : i32, i32, i32
  }
  func.func @transform_2(%arg0: i32, %arg1: i32) -> (i32, i32) {
    %c0_i32 = arith.constant 0 : i32
    %c0_i32_0 = arith.constant 0 : i32
    %c0_i32_1 = arith.constant 0 : i32
    return %c0_i32, %c0_i32_0 : i32, i32
  }
  func.func @transform_3(%arg0: i32, %arg1: i32) -> (i32, i32) {
    %c0_i32 = arith.constant 0 : i32
    %c0_i32_0 = arith.constant 0 : i32
    %c0_i32_1 = arith.constant 0 : i32
    return %c0_i32, %c0_i32_0 : i32, i32
  }
  func.func @transform_4(%arg0: i32, %arg1: i32) -> (i32, i32) {
    %c0_i32 = arith.constant 0 : i32
    %c0_i32_0 = arith.constant 0 : i32
    %c0_i32_1 = arith.constant 0 : i32
    return %c0_i32, %c0_i32_0 : i32, i32
  }
  func.func @transform_5(%arg0: i32, %arg1: i32) -> (i32, i32) {
    %c0_i32 = arith.constant 0 : i32
    %c0_i32_0 = arith.constant 0 : i32
    %c0_i32_1 = arith.constant 0 : i32
    return %c0_i32, %c0_i32_0 : i32, i32
  }
  func.func @transform_6(%arg0: i32, %arg1: i32) -> (i32, i32) {
    %c0_i32 = arith.constant 0 : i32
    %c0_i32_0 = arith.constant 0 : i32
    %c0_i32_1 = arith.constant 0 : i32
    return %c0_i32, %c0_i32_0 : i32, i32
  }
  func.func @transform_7(%arg0: i32, %arg1: i32) -> (i32, i32) {
    %c0_i32 = arith.constant 0 : i32
    %c0_i32_0 = arith.constant 0 : i32
    %c0_i32_1 = arith.constant 0 : i32
    return %c0_i32, %c0_i32_0 : i32, i32
  }
  func.func @transform_8(%arg0: i32, %arg1: i32) -> (i32, i32, i32) {
    %c0_i32 = arith.constant 0 : i32
    %c0_i32_0 = arith.constant 0 : i32
    return %arg0, %arg1, %c0_i32 : i32, i32, i32
  }
  func.func @transform_9(%arg0: i32, %arg1: i32) -> (i32, i32, i32) {
    %c0_i32 = arith.constant 0 : i32
    %c0_i32_0 = arith.constant 0 : i32
    return %arg0, %arg1, %c0_i32 : i32, i32, i32
  }
}

</mosaic_0001>

<bundles_post_ra>
// kernel: tpu_custom_call.1
= control target key start
LH: loop header
LB: loop body
LE: loop exit
PB: predicated region body
PF: predicated region fallthrough
CT: control target
= control target key end

     0   :  { %s2976_s0 = inlined_call_operand.vmem [shape: f32[2,8,32], index: 0, kind: input, shape index: {}]   ;;  %s2977_s1 = inlined_call_operand.vmem [shape: f32[2,128,16], index: 1, kind: input, shape index: {}]   ;;  %s2978_s2 = inlined_call_operand.vmem [shape: f32[32,32], index: 2, kind: input, shape index: {}]   ;;  %s2979_s3 = inlined_call_operand.vmem [shape: f32[1,32], index: 3, kind: input, shape index: {}]   ;;  %s2980_s4 = inlined_call_operand.vmem [shape: f32[16,64], index: 4, kind: input, shape index: {}]   ;;  %s2981_s5 = inlined_call_operand.vmem [shape: f32[1,64], index: 5, kind: input, shape index: {}]   ;;  %s2982_s6 = inlined_call_operand.vmem [shape: f32[32,32], index: 6, kind: input, shape index: {}]   ;;  %s2983_s7 = inlined_call_operand.vmem [shape: f32[1,32], index: 7, kind: input, shape index: {}]   ;;  %s2984_s8 = inlined_call_operand.hbm [shape: f32[2,8,32], index: 8, kind: output, shape index: {0}]   ;;  %s2985_s9 = inlined_call_operand.hbm [shape: f32[2,8,128], index: 9, kind: output, shape index: {1}]  }
   0x1   :  { %2987 = sst [smem:[#allocation10_spill]] %s2976_s0 }
   0x2   :  { %2988 = sst [smem:[#allocation11_spill]] %s2977_s1 }
   0x3   :  { %2989 = sst [smem:[#allocation12_spill]] %s2978_s2 }
   0x4   :  { %2990 = sst [smem:[#allocation13_spill]] %s2980_s4 }
   0x5   :  { %15 = vsyncpa [#allocation5], 0 }
   0x6   :  { %17 = vsyncpa [#allocation5 + $0x1], 0 }
   0x7   :  { %18 = vsyncpa [#allocation7], 0 }
   0x8   :  { %20 = vsyncpa [#allocation7 + $0x1], 0  ;;  %s2220_s30 = smov 0   ;;  %s2222_s10 = smov 0  }
   0x9   :  { %s2224_s11 = smov 0   ;;  %s2226_s12 = smov 0  }
   0xa   :  { %s2228_s13 = smov 0   ;;  %s2230_s14 = smov 0  }
   0xb LB: > { %s1854_s15 = sadd.s32 4294967295, %s2158_s14   ;;  %s1855_s16 = sadd.s32 4294967294, %s2158_s14   ;;  %s2158_s14 = sphi %s2230_s14, %s26_s14   ;;  %s2154_s13 = sphi %s2228_s13, %s3006_s13   ;;  %s2150_s12 = sphi %s2226_s12, %s3005_s12   ;;  %s2146_s11 = sphi %s2224_s11, %s3004_s11   ;;  %s2142_s10 = sphi %s2222_s10, %s3003_s10   ;;  %s2138_s30 = sphi %s2220_s30, %s3002_s30  }
   0xc   : > { %s38_s17 = sadd.s32 1, %s2154_s13  ;;  %s227_s18 = sadd.s32 1, %s2146_s11 }
   0xd   : > { %p40_p0 = scmp.ge.s32.totalorder %s38_s17, 2  ;;  %p237_p1 = scmp.ne.s32.totalorder %s2146_s11, %s2142_s10 }
   0xe   : > { %p238_p2 = scmp.eq.s32.totalorder %s1854_s15, 1  ;;  %p243_p3 = scmp.ne.s32.totalorder %s2142_s10, %s2138_s30 }
   0xf   : > { %s3008_s17 = smov (%p40_p0, %s38_s17), 0  ;;  %p244_p5 = scmp.eq.s32.totalorder %s1855_s16, 1 }
  0x10   : > { %p2260_p4 = por %p238_p2, %p237_p1  ;;  %s222_s20 = ssub.s32 %s2154_s13, %s3008_s17 }
  0x11   : > { %p1858_p6 = scmp.ge.s32.totalorder %s2158_s14, 1  ;;  %p225_p7 = scmp.eq.s32.totalorder %s222_s20, 0 }
  0x12   : > { %p2267_p8 = por %p244_p5, %p243_p3  ;;  %p326_p9 = scmp.lt.s32.totalorder %s2158_s14, 3 }
  0x13   : > { %s2273_s22 = scalar_select %p225_p7, %s2146_s11, %s227_s18  }
  0x14   : > { %p327_p10 = pnand %p1858_p6, %p326_p9 }
  0x15   : > { %s2993_s4 = sld [smem:[#allocation13_spill]] (!%p327_p10)  ;;  %p374_p11 = scmp.lt.s32.totalorder (!%p327_p10), %s2150_s12, 1 }
  0x16   : > { %330 = sbr.rel (%p327_p10) target bundleno = 1234 (0x4d2), region = 52  ;;  %s2994_s1 = sld [smem:[#allocation11_spill]] (!%p327_p10) }
  0x17   : > { %s2995_s2 = sld [smem:[#allocation12_spill]] (!%p327_p10)  ;;  %s2162_s20 = smov (!%p327_p10), 112  }
  0x18   : > { %s2996_s0 = sld [smem:[#allocation10_spill]] (!%p327_p10)  ;;  %s2164_s26 = smov (!%p327_p10), 80  }
  0x19   : > { %s2166_s29 = smov (!%p327_p10), 72   ;;  %s2891_s15 = sand.u32 (!%p327_p10), 1, %s2142_s10  }
  0x1a   : > { %s2167_s18 = smov (!%p327_p10), 8  }
  0x1b   : > { %v407_v0 = vld [vmem:[%s2993_s4 + $0x8] sm:$0xff]  ;;  %v406_v1 = vld [vmem:[%s2993_s4] sm:$0xff]  ;;  %s2283_s27 = scalar_select %p374_p11, %s2150_s12, 1  ;;  %vm412_vm0 = vcmask 130048   ;;  %vm1022_vm1 = vcmask 261120   ;;  %vm526_vm2 = vcmask 64512  }
  0x1c   : > { %475 = vmatpush.msra.mxu0 %v407_v0  ;;  %1957 = vmatpush.msra.mxu1 %v407_v0  ;;  %v2343_v23 = vld [vmem:[%s2981_s5] ss:$0 sm:$0xff]  ;;  %s2161_s4 = smov 104  }
  0x1d   : > { %s1956_s28 = sshll.u32 %s2283_s27, 7  ;;  %v1017_v18 = vld [vmem:[%s2995_s2 + $0x18] sm:$0xff]  ;;  %v1016_v19 = vld [vmem:[%s2995_s2 + $0x10] sm:$0xff]  ;;  %s1861_s25 = sshll.u32 %s2283_s27, 3  ;;  %v1015_v20 = vld [vmem:[%s2995_s2 + $0x8] sm:$0xff] }
  0x1e   : > { %476 = vmatpush.msra.mxu0 %v406_v1  ;;  %1958 = vmatpush.msra.mxu1 %v406_v1  ;;  %s2289_s16 = scalar_lea.vmem %s2994_s1, %s1956_s28  ;;  %v1014_v21 = vld [vmem:[%s2995_s2] sm:$0xff]  ;;  %s2160_s1 = smov 120  }
  0x1f   : > { %v390_v2 = vld [vmem:[%s2289_s16] sm:$0xff]  ;;  %v404_v3 = vld [vmem:[%s2289_s16 + $0x70] sm:$0xff]  ;;  %v391_v4 = vld [vmem:[%s2289_s16 + $0x8] sm:$0xff]  ;;  %s2165_s28 = smov 88  }
  0x20   : > { %1864 = vmatmul.msk.f32.vlgmr.msra.gmra.mxu0 %vm412_vm0, %v390_v2  ;;  %1878 = vmatmul.msk.f32.vlgmr.msra.gmra.mxu1 %vm412_vm0, %v404_v3  ;;  %v405_v5 = vld [vmem:[%s2289_s16 + $0x78] sm:$0xff]  ;;  %v392_v6 = vld [vmem:[%s2289_s16 + $0x10] sm:$0xff]  ;;  %v394_v8 = vld [vmem:[%s2289_s16 + $0x20] sm:$0xff] }
  0x21   : > { %v393_v7 = vld [vmem:[%s2289_s16 + $0x18] sm:$0xff]  ;;  %v395_v9 = vld [vmem:[%s2289_s16 + $0x28] sm:$0xff]  ;;  %v396_v10 = vld [vmem:[%s2289_s16 + $0x30] sm:$0xff]  ;;  %1038 = vmatpush.msrb.mxu1 %v1017_v18 }
  0x22   : > { %v397_v11 = vld [vmem:[%s2289_s16 + $0x38] sm:$0xff]  ;;  %v398_v12 = vld [vmem:[%s2289_s16 + $0x40] sm:$0xff]  ;;  %v399_v13 = vld [vmem:[%s2289_s16 + $0x48] sm:$0xff] }
  0x23   : > { %v400_v14 = vld [vmem:[%s2289_s16 + $0x50] sm:$0xff]  ;;  %v401_v15 = vld [vmem:[%s2289_s16 + $0x58] sm:$0xff]  ;;  %v402_v16 = vld [vmem:[%s2289_s16 + $0x60] sm:$0xff]  ;;  %1039 = vmatpush.msrb.mxu1 %v1016_v19 }
  0x24   : > { %v403_v17 = vld [vmem:[%s2289_s16 + $0x68] sm:$0xff]  ;;  %s380_s16 = scalar_lea.vmem %s2996_s0, %s1861_s25  ;;  %s2163_s25 = smov 96  }
  0x25   : > { %1040 = vmatpush.msrb.mxu1 %v1015_v20  ;;  %v1013_v22 = vld [vmem:[%s380_s16] sm:$0xff]  ;;  %s2986_s16 = sshll.u32 %s2891_s15, 3 }
  0x26   : > { %s2898_s27 = scalar_lea.vmem [#allocation6], %s2986_s16 }
  0x27   : > { %1041 = vmatpush.msrb.mxu1 %v1014_v21  ;;  %s1734_s24 = sshll.u32 %s2898_s27, 4  ;;  %s1735_s24 = int_to_ptr.vmem [resolvable:$true] %s1734_s24 }
  0x28   : > { %1865 = vmatmul.msk.f32.gmra.mxu0 %vm412_vm0, %v391_v4  ;;  %1879 = vmatmul.msk.f32.gmra.mxu1 %vm412_vm0, %v405_v5 }
  0x30   : > { %1866 = vmatmul.msk.f32.gmra.mxu0 %vm412_vm0, %v392_v6  ;;  %1880 = vmatmul.msk.f32.vlgmr.msrb.gmra.mxu1 %vm1022_vm1, %v1013_v22 }
  0x38   : > { %1867 = vmatmul.msk.f32.gmra.mxu0 %vm412_vm0, %v393_v7 }
  0x40   : > { %1868 = vmatmul.msk.f32.gmra.mxu0 %vm412_vm0, %v394_v8 }
  0x48   : > { %1869 = vmatmul.msk.f32.gmra.mxu0 %vm412_vm0, %v395_v9 }
  0x50   : > { %1870 = vmatmul.msk.f32.gmra.mxu0 %vm412_vm0, %v396_v10 }
  0x58   : > { %1871 = vmatmul.msk.f32.gmra.mxu0 %vm412_vm0, %v397_v11 }
  0x60   : > { %1872 = vmatmul.msk.f32.gmra.mxu0 %vm412_vm0, %v398_v12 }
  0x68   : > { %1873 = vmatmul.msk.f32.gmra.mxu0 %vm412_vm0, %v399_v13  ;;  %v2030_v13 = vld [vmem:[%s2979_s3] ss:$0 sm:$0xff] }
  0x70   : > { %1874 = vmatmul.msk.f32.gmra.mxu0 %vm412_vm0, %v400_v14 }
  0x78   : > { %1875 = vmatmul.msk.f32.gmra.mxu0 %vm412_vm0, %v401_v15 }
  0x80   : > { %1876 = vmatmul.msk.f32.gmra.mxu0 %vm412_vm0, %v402_v16 }
  0x88   : > { %1877 = vmatmul.msk.f32.gmra.mxu0 %vm412_vm0, %v403_v17 }
  0x9d   : > { %v478_v24 = vpop.f32.mrf.mxu0  ;;  %v520_v26 = vpop.f32.mrf.mxu1 }
  0x9e   : > { %v2346_v25 = vadd.f32 %v2343_v23, %v478_v24  ;;  %v2349_v27 = vadd.f32 %v2343_v23, %v520_v26 }
  0xa0   : > { %527 = vst.msk [vmem:[#allocation2] sm:$0xff] %vm526_vm2, %v2346_v25  ;;  %651 = vrot.lane.b32.xlu1 %v2349_v27, %s2160_s1  ;;  %911 = vrot.lane.b32.xlu2 %v2349_v27, %s2161_s4 }
  0xa1   : > { %541 = vst.msk [vmem:[#allocation2 + $0x70] sm:$0xff] %vm526_vm2, %v2349_v27 }
  0xa5   : > { %v481_v28 = vpop.f32.mrf.mxu0  ;;  %v523_v30 = vpop.f32.mrf.mxu1 }
  0xa6   : > { %v2360_v29 = vadd.f32 %v2343_v23, %v481_v28  ;;  %v2363_v31 = vadd.f32 %v2343_v23, %v523_v30 }
  0xa7   : > { %v1049_v26 = vld [vmem:[#allocation2] sm:$0xff] }
  0xa8   : > { %528 = vst.msk [vmem:[#allocation2 + $0x8] sm:$0xff] %vm526_vm2, %v2360_v29  ;;  %653 = vrot.lane.b32.xlu0 %v2363_v31, %s2160_s1  ;;  %781 = vrot.lane.b32.xlu1 %v2349_v27, %s2162_s20  ;;  %v1063_v35 = vld [vmem:[#allocation2 + $0x70] sm:$0xff] }
  0xa9   : > { %542 = vst.msk [vmem:[#allocation2 + $0x78] sm:$0xff] %vm526_vm2, %v2363_v31  ;;  %913 = vrot.lane.b32.xlu2 %v2363_v31, %s2161_s4 }
  0xad   : > { %v484_v32 = vpop.f32.mrf.mxu0  ;;  %v1043_v14 = vpop.f32.mrf.mxu1 }
  0xae   : > { %v2376_v33 = vadd.f32 %v2343_v23, %v484_v32  ;;  %v1044_v16 = vadd.f32 %v2030_v13, %v1043_v14 }
  0xaf   : > { %v1050_v21 = vld [vmem:[#allocation2 + $0x8] sm:$0xff] }
  0xb0   : > { %529 = vst.msk [vmem:[#allocation2 + $0x10] sm:$0xff] %vm526_vm2, %v2376_v33  ;;  %v1064_v34 = vld [vmem:[#allocation2 + $0x78] sm:$0xff]  ;;  %783 = vrot.lane.b32.xlu0 %v2363_v31, %s2162_s20 }
  0xb1   : > { %1881 = vmatpush.xpose.msk.msra.mxu2 %vm526_vm2, %v1064_v34 }
  0xb5   : > { %v487_v36 = vpop.f32.mrf.mxu0  ;;  %1882 = vmatpush.xpose.msk.msra.mxu2 %vm526_vm2, %v1063_v35 }
  0xb6   : > { %v2385_v37 = vadd.f32 %v2343_v23, %v487_v36 }
  0xb7   : > { %v1051_v20 = vld [vmem:[#allocation2 + $0x10] sm:$0xff] }
  0xb8   : > { %530 = vst.msk [vmem:[#allocation2 + $0x18] sm:$0xff] %vm526_vm2, %v2385_v37 }
  0xbd   : > { %v490_v38 = vpop.f32.mrf.mxu0 }
  0xbe   : > { %v2390_v39 = vadd.f32 %v2343_v23, %v490_v38 }
  0xbf   : > { %v1052_v17 = vld [vmem:[#allocation2 + $0x18] sm:$0xff] }
  0xc0   : > { %531 = vst.msk [vmem:[#allocation2 + $0x20] sm:$0xff] %vm526_vm2, %v2390_v39 }
  0xc5   : > { %v493_v40 = vpop.f32.mrf.mxu0 }
  0xc6   : > { %v2395_v41 = vadd.f32 %v2343_v23, %v493_v40 }
  0xc7   : > { %v1053_v15 = vld [vmem:[#allocation2 + $0x20] sm:$0xff] }
  0xc8   : > { %532 = vst.msk [vmem:[#allocation2 + $0x28] sm:$0xff] %vm526_vm2, %v2395_v41  ;;  %763 = vrot.lane.b32.xlu1 %v2395_v41, %s2162_s20  ;;  %633 = vrot.lane.b32.xlu0 %v2395_v41, %s2160_s1 }
  0xcd   : > { %v496_v42 = vpop.f32.mrf.mxu0 }
  0xce   : > { %v2404_v43 = vadd.f32 %v2343_v23, %v496_v42 }
  0xcf   : > { %v1054_v12 = vld [vmem:[#allocation2 + $0x28] sm:$0xff] }
  0xd0   : > { %533 = vst.msk [vmem:[#allocation2 + $0x30] sm:$0xff] %vm526_vm2, %v2404_v43  ;;  %765 = vrot.lane.b32.xlu1 %v2404_v43, %s2162_s20  ;;  %635 = vrot.lane.b32.xlu0 %v2404_v43, %s2160_s1 }
  0xd5   : > { %v499_v44 = vpop.f32.mrf.mxu0 }
  0xd6   : > { %v2413_v45 = vadd.f32 %v2343_v23, %v499_v44 }
  0xd7   : > { %v1055_v11 = vld [vmem:[#allocation2 + $0x30] sm:$0xff] }
  0xd8   : > { %534 = vst.msk [vmem:[#allocation2 + $0x38] sm:$0xff] %vm526_vm2, %v2413_v45  ;;  %767 = vrot.lane.b32.xlu1 %v2413_v45, %s2162_s20  ;;  %637 = vrot.lane.b32.xlu0 %v2413_v45, %s2160_s1 }
  0xdd   : > { %v502_v46 = vpop.f32.mrf.mxu0 }
  0xde   : > { %v2422_v47 = vadd.f32 %v2343_v23, %v502_v46 }
  0xdf   : > { %v1056_v9 = vld [vmem:[#allocation2 + $0x38] sm:$0xff] }
  0xe0   : > { %535 = vst.msk [vmem:[#allocation2 + $0x40] sm:$0xff] %vm526_vm2, %v2422_v47  ;;  %769 = vrot.lane.b32.xlu1 %v2422_v47, %s2162_s20  ;;  %639 = vrot.lane.b32.xlu0 %v2422_v47, %s2160_s1 }
  0xe5   : > { %v505_v48 = vpop.f32.mrf.mxu0 }
  0xe6   : > { %v2431_v49 = vadd.f32 %v2343_v23, %v505_v48 }
  0xe7   : > { %v1057_v6 = vld [vmem:[#allocation2 + $0x40] sm:$0xff] }
  0xe8   : > { %536 = vst.msk [vmem:[#allocation2 + $0x48] sm:$0xff] %vm526_vm2, %v2431_v49  ;;  %901 = vrot.lane.b32.xlu2 %v2431_v49, %s2161_s4  ;;  %771 = vrot.lane.b32.xlu1 %v2431_v49, %s2162_s20 }
  0xe9   : > { %641 = vrot.lane.b32.xlu0 %v2431_v49, %s2160_s1 }
  0xed   : > { %v508_v50 = vpop.f32.mrf.mxu0 }
  0xee   : > { %v2442_v51 = vadd.f32 %v2343_v23, %v508_v50 }
  0xef   : > { %v1058_v5 = vld [vmem:[#allocation2 + $0x48] sm:$0xff] }
  0xf0   : > { %537 = vst.msk [vmem:[#allocation2 + $0x50] sm:$0xff] %vm526_vm2, %v2442_v51  ;;  %903 = vrot.lane.b32.xlu2 %v2442_v51, %s2161_s4  ;;  %773 = vrot.lane.b32.xlu1 %v2442_v51, %s2162_s20 }
  0xf1   : > { %643 = vrot.lane.b32.xlu0 %v2442_v51, %s2160_s1 }
  0xf5   : > { %v511_v52 = vpop.f32.mrf.mxu0 }
  0xf6   : > { %v2453_v53 = vadd.f32 %v2343_v23, %v511_v52 }
  0xf7   : > { %v1059_v2 = vld [vmem:[#allocation2 + $0x50] sm:$0xff] }
  0xf8   : > { %538 = vst.msk [vmem:[#allocation2 + $0x58] sm:$0xff] %vm526_vm2, %v2453_v53  ;;  %905 = vrot.lane.b32.xlu2 %v2453_v53, %s2161_s4  ;;  %775 = vrot.lane.b32.xlu1 %v2453_v53, %s2162_s20 }
  0xf9   : > { %645 = vrot.lane.b32.xlu0 %v2453_v53, %s2160_s1 }
  0xfa   : > { %v912_v54 = vpop.permute.xlu2 %911 }
  0xfb   : > { %946 = vst.msk [vmem:[#allocation2 + $0x1f0] sm:$0xff] %vm526_vm2, %v912_v54 }
  0xfd   : > { %v514_v55 = vpop.f32.mrf.mxu0 }
  0xfe   : > { %v2465_v56 = vadd.f32 %v2343_v23, %v514_v55 }
  0xff   : > { %v1060_v1 = vld [vmem:[#allocation2 + $0x58] sm:$0xff] }
 0x100   : > { %539 = vst.msk [vmem:[#allocation2 + $0x60] sm:$0xff] %vm526_vm2, %v2465_v56  ;;  %907 = vrot.lane.b32.xlu2 %v2465_v56, %s2161_s4  ;;  %777 = vrot.lane.b32.xlu1 %v2465_v56, %s2162_s20 }
 0x101   : > { %647 = vrot.lane.b32.xlu0 %v2465_v56, %s2160_s1 }
 0x102   : > { %v1514_v62 = vld [vmem:[#allocation2 + $0x1f0] sm:$0xff] }
 0x103   : > { %v914_v57 = vpop.permute.xlu2 %913 }
 0x104   : > { %947 = vst.msk [vmem:[#allocation2 + $0x1f8] sm:$0xff] %vm526_vm2, %v914_v57 }
 0x105   : > { %v517_v58 = vpop.f32.mrf.mxu0 }
 0x106   : > { %v2477_v59 = vadd.f32 %v2343_v23, %v517_v58 }
 0x107   : > { %v1061_v63 = vld [vmem:[#allocation2 + $0x60] sm:$0xff] }
 0x108   : > { %540 = vst.msk [vmem:[#allocation2 + $0x68] sm:$0xff] %vm526_vm2, %v2477_v59  ;;  %649 = vrot.lane.b32.xlu2 %v2477_v59, %s2160_s1  ;;  %761 = vrot.lane.b32.xlu1 %v2390_v39, %s2162_s20 }
 0x109   : > { %631 = vrot.lane.b32.xlu0 %v2390_v39, %s2160_s1 }
 0x10b   : > { %v1515_v60 = vld [vmem:[#allocation2 + $0x1f8] sm:$0xff] }
 0x10c   : > { %1932 = vmatpush.xpose.msk.msrb.mxu0 %vm526_vm2, %v1515_v60 }
 0x10f   : > { %v1062_v61 = vld [vmem:[#allocation2 + $0x68] sm:$0xff] }
 0x110   : > { %1883 = vmatpush.xpose.msk.msra.mxu2 %vm526_vm2, %v1062_v61  ;;  %779 = vrot.lane.b32.xlu2 %v2477_v59, %s2162_s20 }
 0x111   : > { %759 = vrot.lane.b32.xlu1 %v2385_v37, %s2162_s20  ;;  %629 = vrot.lane.b32.xlu0 %v2385_v37, %s2160_s1 }
 0x112   : > { %1933 = vmatpush.xpose.msk.msrb.mxu0 %vm526_vm2, %v1514_v62  ;;  %v652_v0 = vpop.permute.xlu1 %651 }
 0x113   : > { %686 = vst.msk [vmem:[#allocation2 + $0xf0] sm:$0xff] %vm526_vm2, %v652_v0 }
 0x114   : > { %1884 = vmatpush.xpose.msk.msra.mxu2 %vm526_vm2, %v1061_v63 }
 0x118   : > { %1885 = vmatpush.xpose.msk.msra.mxu2 %vm526_vm2, %v1060_v1  ;;  %899 = vrot.lane.b32.xlu2 %v2422_v47, %s2161_s4 }
 0x119   : > { %757 = vrot.lane.b32.xlu1 %v2376_v33, %s2162_s20  ;;  %627 = vrot.lane.b32.xlu0 %v2376_v33, %s2160_s1 }
 0x11a   : > { %v654_v3 = vpop.permute.xlu0 %653  ;;  %v782_v4 = vpop.permute.xlu1 %781  ;;  %v1214_v10 = vld [vmem:[#allocation2 + $0xf0] sm:$0xff] }
 0x11b   : > { %687 = vst.msk [vmem:[#allocation2 + $0xf8] sm:$0xff] %vm526_vm2, %v654_v3 }
 0x11c   : > { %1886 = vmatpush.xpose.msk.msra.mxu2 %vm526_vm2, %v1059_v2  ;;  %816 = vst.msk [vmem:[#allocation2 + $0x170] sm:$0xff] %vm526_vm2, %v782_v4 }
 0x120   : > { %1887 = vmatpush.xpose.msk.msra.mxu2 %vm526_vm2, %v1058_v5  ;;  %909 = vrot.lane.b32.xlu2 %v2477_v59, %s2161_s4 }
 0x121   : > { %755 = vrot.lane.b32.xlu1 %v2360_v29, %s2162_s20  ;;  %625 = vrot.lane.b32.xlu0 %v2360_v29, %s2160_s1 }
 0x122   : > { %v784_v7 = vpop.permute.xlu0 %783  ;;  %v1215_v8 = vld [vmem:[#allocation2 + $0xf8] sm:$0xff] }
 0x123   : > { %817 = vst.msk [vmem:[#allocation2 + $0x178] sm:$0xff] %vm526_vm2, %v784_v7  ;;  %1898 = vmatpush.xpose.msk.msra.mxu1 %vm526_vm2, %v1215_v8  ;;  %v1364_v30 = vld [vmem:[#allocation2 + $0x170] sm:$0xff] }
 0x124   : > { %1888 = vmatpush.xpose.msk.msra.mxu2 %vm526_vm2, %v1057_v6 }
 0x127   : > { %1899 = vmatpush.xpose.msk.msra.mxu1 %vm526_vm2, %v1214_v10 }
 0x128   : > { %897 = vrot.lane.b32.xlu2 %v2413_v45, %s2161_s4  ;;  %1889 = vmatpush.xpose.msk.msra.mxu2 %vm526_vm2, %v1056_v9 }
 0x129   : > { %753 = vrot.lane.b32.xlu1 %v2346_v25, %s2162_s20  ;;  %623 = vrot.lane.b32.xlu0 %v2346_v25, %s2160_s1 }
 0x12a   : > { %v1365_v28 = vld [vmem:[#allocation2 + $0x178] sm:$0xff] }
 0x12c   : > { %1890 = vmatpush.xpose.msk.msra.mxu2 %vm526_vm2, %v1055_v11 }
 0x130   : > { %895 = vrot.lane.b32.xlu2 %v2404_v43, %s2161_s4  ;;  %1891 = vmatpush.xpose.msk.msra.mxu2 %vm526_vm2, %v1054_v12 }
 0x131   : > { %885 = vrot.lane.b32.xlu1 %v2360_v29, %s2161_s4  ;;  %887 = vrot.lane.b32.xlu0 %v2376_v33, %s2161_s4 }
 0x134   : > { %1892 = vmatpush.xpose.msk.msra.mxu2 %vm526_vm2, %v1053_v15 }
 0x138   : > { %893 = vrot.lane.b32.xlu2 %v2395_v41, %s2161_s4  ;;  %1893 = vmatpush.xpose.msk.msra.mxu2 %vm526_vm2, %v1052_v17 }
 0x139   : > { %883 = vrot.lane.b32.xlu1 %v2346_v25, %s2161_s4  ;;  %1366 = vrot.lane.b32.xlu0 %v1044_v16, %s2162_s20 }
 0x13a   : > { %v764_v18 = vpop.permute.xlu1 %763  ;;  %v634_v19 = vpop.permute.xlu0 %633 }
 0x13b   : > { %807 = vst.msk [vmem:[#allocation2 + $0x128] sm:$0xff] %vm526_vm2, %v764_v18 }
 0x13c   : > { %677 = vst.msk [vmem:[#allocation2 + $0xa8] sm:$0xff] %vm526_vm2, %v634_v19  ;;  %1894 = vmatpush.xpose.msk.msra.mxu2 %vm526_vm2, %v1051_v20 }
 0x140   : > { %891 = vrot.lane.b32.xlu2 %v2390_v39, %s2161_s4  ;;  %1895 = vmatpush.xpose.msk.msra.mxu2 %vm526_vm2, %v1050_v21 }
 0x141   : > { %581 = vrot.lane.b32.xlu1 %v2453_v53, %s2163_s25  ;;  %587 = vrot.lane.b32.xlu0 %v2349_v27, %s2163_s25 }
 0x142   : > { %v902_v22 = vpop.permute.xlu2 %901  ;;  %v766_v23 = vpop.permute.xlu1 %765 }
 0x143   : > { %941 = vst.msk [vmem:[#allocation2 + $0x1c8] sm:$0xff] %vm526_vm2, %v902_v22  ;;  %v636_v24 = vpop.permute.xlu0 %635 }
 0x144   : > { %808 = vst.msk [vmem:[#allocation2 + $0x130] sm:$0xff] %vm526_vm2, %v766_v23  ;;  %1896 = vmatpush.xpose.msk.msra.mxu2 %vm526_vm2, %v1049_v26 }
 0x145   : > { %678 = vst.msk [vmem:[#allocation2 + $0xb0] sm:$0xff] %vm526_vm2, %v636_v24 }
 0x147   : > { %1897 = vmatmul.msk.f32.vlgmr.msra.gmra.mxu2 %vm526_vm2, %v1044_v16 }
 0x148   : > { %1915 = vmatpush.xpose.msk.msrb.mxu2 %vm526_vm2, %v1365_v28  ;;  %889 = vrot.lane.b32.xlu2 %v2385_v37, %s2161_s4 }
 0x149   : > { %577 = vrot.lane.b32.xlu1 %v2431_v49, %s2163_s25  ;;  %565 = vrot.lane.b32.xlu0 %v2385_v37, %s2163_s25 }
 0x14a   : > { %v904_v32 = vpop.permute.xlu2 %903  ;;  %v768_v34 = vpop.permute.xlu1 %767  ;;  %v1509_v24 = vld [vmem:[#allocation2 + $0x1c8] sm:$0xff] }
 0x14b   : > { %942 = vst.msk [vmem:[#allocation2 + $0x1d0] sm:$0xff] %vm526_vm2, %v904_v32  ;;  %v638_v35 = vpop.permute.xlu0 %637 }
 0x14c   : > { %1916 = vmatpush.xpose.msk.msrb.mxu2 %vm526_vm2, %v1364_v30  ;;  %809 = vst.msk [vmem:[#allocation2 + $0x138] sm:$0xff] %vm526_vm2, %v768_v34  ;;  %v1356_v30 = vld [vmem:[#allocation2 + $0x130] sm:$0xff]  ;;  %v1355_v34 = vld [vmem:[#allocation2 + $0x128] sm:$0xff] }
 0x14d   : > { %679 = vst.msk [vmem:[#allocation2 + $0xb8] sm:$0xff] %vm526_vm2, %v638_v35  ;;  %v1206_v32 = vld [vmem:[#allocation2 + $0xb0] sm:$0xff]  ;;  %v1205_v35 = vld [vmem:[#allocation2 + $0xa8] sm:$0xff] }
 0x150   : > { %1216 = vrot.lane.b32.xlu2 %v1044_v16, %s2160_s1  ;;  %s2168_s1 = smov 16  }
 0x151   : > { %573 = vrot.lane.b32.xlu1 %v2413_v45, %s2163_s25  ;;  %561 = vrot.lane.b32.xlu0 %v2360_v29, %s2163_s25 }
 0x152   : > { %v906_v36 = vpop.permute.xlu2 %905  ;;  %v770_v38 = vpop.permute.xlu1 %769  ;;  %v1510_v20 = vld [vmem:[#allocation2 + $0x1d0] sm:$0xff] }
 0x153   : > { %943 = vst.msk [vmem:[#allocation2 + $0x1d8] sm:$0xff] %vm526_vm2, %v906_v36  ;;  %v640_v40 = vpop.permute.xlu0 %639  ;;  %v1357_v21 = vld [vmem:[#allocation2 + $0x138] sm:$0xff] }
 0x154   : > { %810 = vst.msk [vmem:[#allocation2 + $0x140] sm:$0xff] %vm526_vm2, %v770_v38  ;;  %v1207_v22 = vld [vmem:[#allocation2 + $0xb8] sm:$0xff] }
 0x155   : > { %680 = vst.msk [vmem:[#allocation2 + $0xc0] sm:$0xff] %vm526_vm2, %v640_v40 }
 0x158   : > { %1516 = vrot.lane.b32.xlu2 %v1044_v16, %s2161_s4  ;;  %s2169_s4 = smov 24  }
 0x159   : > { %569 = vrot.lane.b32.xlu1 %v2395_v41, %s2163_s25  ;;  %559 = vrot.lane.b32.xlu0 %v2346_v25, %s2163_s25 }
 0x15a   : > { %v908_v42 = vpop.permute.xlu2 %907  ;;  %v772_v44 = vpop.permute.xlu1 %771  ;;  %v1511_v15 = vld [vmem:[#allocation2 + $0x1d8] sm:$0xff] }
 0x15b   : > { %944 = vst.msk [vmem:[#allocation2 + $0x1e0] sm:$0xff] %vm526_vm2, %v908_v42  ;;  %v642_v46 = vpop.permute.xlu0 %641  ;;  %v1358_v18 = vld [vmem:[#allocation2 + $0x140] sm:$0xff] }
 0x15c   : > { %811 = vst.msk [vmem:[#allocation2 + $0x148] sm:$0xff] %vm526_vm2, %v772_v44  ;;  %v1208_v19 = vld [vmem:[#allocation2 + $0xc0] sm:$0xff] }
 0x15d   : > { %681 = vst.msk [vmem:[#allocation2 + $0xc8] sm:$0xff] %vm526_vm2, %v642_v46 }
 0x160   : > { %589 = vrot.lane.b32.xlu2 %v2363_v31, %s2163_s25 }
 0x161   : > { %567 = vrot.lane.b32.xlu1 %v2390_v39, %s2163_s25  ;;  %848 = vrot.lane.b32.xlu0 %v2363_v31, %s2164_s26 }
 0x162   : > { %v650_v48 = vpop.permute.xlu2 %649  ;;  %v774_v50 = vpop.permute.xlu1 %773  ;;  %v1512_v11 = vld [vmem:[#allocation2 + $0x1e0] sm:$0xff] }
 0x163   : > { %685 = vst.msk [vmem:[#allocation2 + $0xe8] sm:$0xff] %vm526_vm2, %v650_v48  ;;  %v644_v52 = vpop.permute.xlu0 %643  ;;  %v1359_v12 = vld [vmem:[#allocation2 + $0x148] sm:$0xff] }
 0x164   : > { %812 = vst.msk [vmem:[#allocation2 + $0x150] sm:$0xff] %vm526_vm2, %v774_v50  ;;  %v1209_v13 = vld [vmem:[#allocation2 + $0xc8] sm:$0xff] }
 0x165   : > { %682 = vst.msk [vmem:[#allocation2 + $0xd0] sm:$0xff] %vm526_vm2, %v644_v52 }
 0x168   : > { %583 = vrot.lane.b32.xlu2 %v2465_v56, %s2163_s25 }
 0x169   : > { %718 = vrot.lane.b32.xlu1 %v2363_v31, %s2165_s28  ;;  %846 = vrot.lane.b32.xlu0 %v2349_v27, %s2164_s26 }
 0x16a   : > { %v780_v54 = vpop.permute.xlu2 %779  ;;  %v776_v55 = vpop.permute.xlu1 %775  ;;  %v1213_v57 = vld [vmem:[#allocation2 + $0xe8] sm:$0xff] }
 0x16b   : > { %815 = vst.msk [vmem:[#allocation2 + $0x168] sm:$0xff] %vm526_vm2, %v780_v54  ;;  %v646_v58 = vpop.permute.xlu0 %645  ;;  %1900 = vmatpush.xpose.msk.msra.mxu1 %vm526_vm2, %v1213_v57  ;;  %v1360_v9 = vld [vmem:[#allocation2 + $0x150] sm:$0xff] }
 0x16c   : > { %813 = vst.msk [vmem:[#allocation2 + $0x158] sm:$0xff] %vm526_vm2, %v776_v55  ;;  %v1210_v10 = vld [vmem:[#allocation2 + $0xd0] sm:$0xff] }
 0x16d   : > { %683 = vst.msk [vmem:[#allocation2 + $0xd8] sm:$0xff] %vm526_vm2, %v646_v58 }
 0x170   : > { %579 = vrot.lane.b32.xlu2 %v2442_v51, %s2163_s25 }
 0x171   : > { %563 = vrot.lane.b32.xlu1 %v2376_v33, %s2163_s25  ;;  %978 = vrot.lane.b32.xlu0 %v2363_v31, %s2166_s29 }
 0x172   : > { %v900_v60 = vpop.permute.xlu2 %899  ;;  %v778_v61 = vpop.permute.xlu1 %777  ;;  %v1363_v62 = vld [vmem:[#allocation2 + $0x168] sm:$0xff] }
 0x173   : > { %940 = vst.msk [vmem:[#allocation2 + $0x1c0] sm:$0xff] %vm526_vm2, %v900_v60  ;;  %v648_v63 = vpop.permute.xlu0 %647  ;;  %1917 = vmatpush.xpose.msk.msrb.mxu2 %vm526_vm2, %v1363_v62  ;;  %v1361_v4 = vld [vmem:[#allocation2 + $0x158] sm:$0xff] }
 0x174   : > { %814 = vst.msk [vmem:[#allocation2 + $0x160] sm:$0xff] %vm526_vm2, %v778_v61  ;;  %v1211_v5 = vld [vmem:[#allocation2 + $0xd8] sm:$0xff] }
 0x175   : > { %684 = vst.msk [vmem:[#allocation2 + $0xe0] sm:$0xff] %vm526_vm2, %v648_v63 }
 0x178   : > { %575 = vrot.lane.b32.xlu2 %v2422_v47, %s2163_s25 }
 0x179   : > { %716 = vrot.lane.b32.xlu1 %v2349_v27, %s2165_s28  ;;  %976 = vrot.lane.b32.xlu0 %v2349_v27, %s2166_s29 }
 0x17a   : > { %v910_v31 = vpop.permute.xlu2 %909  ;;  %v762_v0 = vpop.permute.xlu1 %761 }
 0x17b   : > { %945 = vst.msk [vmem:[#allocation2 + $0x1e8] sm:$0xff] %vm526_vm2, %v910_v31  ;;  %v632_v1 = vpop.permute.xlu0 %631  ;;  %v1362_v2 = vld [vmem:[#allocation2 + $0x160] sm:$0xff] }
 0x17c   : > { %806 = vst.msk [vmem:[#allocation2 + $0x120] sm:$0xff] %vm526_vm2, %v762_v0  ;;  %v1212_v3 = vld [vmem:[#allocation2 + $0xe0] sm:$0xff]  ;;  %1918 = vmatpush.xpose.msk.msrb.mxu2 %vm526_vm2, %v1362_v2 }
 0x17d   : > { %676 = vst.msk [vmem:[#allocation2 + $0xa0] sm:$0xff] %vm526_vm2, %v632_v1  ;;  %1901 = vmatpush.xpose.msk.msra.mxu1 %vm526_vm2, %v1212_v3 }
 0x180   : > { %1919 = vmatpush.xpose.msk.msrb.mxu2 %vm526_vm2, %v1361_v4  ;;  %571 = vrot.lane.b32.xlu2 %v2404_v43, %s2163_s25 }
 0x181   : > { %1902 = vmatpush.xpose.msk.msra.mxu1 %vm526_vm2, %v1211_v5  ;;  %710 = vrot.lane.b32.xlu1 %v2453_v53, %s2165_s28 }
 0x182   : > { %844 = vrot.lane.b32.xlu0 %v2477_v59, %s2164_s26  ;;  %v898_v27 = vpop.permute.xlu2 %897  ;;  %v1513_v6 = vld [vmem:[#allocation2 + $0x1e8] sm:$0xff] }
 0x183   : > { %939 = vst.msk [vmem:[#allocation2 + $0x1b8] sm:$0xff] %vm526_vm2, %v898_v27  ;;  %v760_v7 = vpop.permute.xlu1 %759  ;;  %v630_v8 = vpop.permute.xlu0 %629  ;;  %1934 = vmatpush.xpose.msk.msrb.mxu0 %vm526_vm2, %v1513_v6  ;;  %v1354_v44 = vld [vmem:[#allocation2 + $0x120] sm:$0xff] }
 0x184   : > { %805 = vst.msk [vmem:[#allocation2 + $0x118] sm:$0xff] %vm526_vm2, %v760_v7  ;;  %1920 = vmatpush.xpose.msk.msrb.mxu2 %vm526_vm2, %v1360_v9  ;;  %v1204_v46 = vld [vmem:[#allocation2 + $0xa0] sm:$0xff] }
 0x185   : > { %675 = vst.msk [vmem:[#allocation2 + $0x98] sm:$0xff] %vm526_vm2, %v630_v8  ;;  %1903 = vmatpush.xpose.msk.msra.mxu1 %vm526_vm2, %v1210_v10 }
 0x187   : > { %1935 = vmatpush.xpose.msk.msrb.mxu0 %vm526_vm2, %v1512_v11 }
 0x188   : > { %1921 = vmatpush.xpose.msk.msrb.mxu2 %vm526_vm2, %v1359_v12  ;;  %712 = vrot.lane.b32.xlu2 %v2465_v56, %s2165_s28 }
 0x189   : > { %1904 = vmatpush.xpose.msk.msra.mxu1 %vm526_vm2, %v1209_v13  ;;  %585 = vrot.lane.b32.xlu1 %v2477_v59, %s2163_s25 }
 0x18a   : > { %974 = vrot.lane.b32.xlu0 %v2477_v59, %s2166_s29  ;;  %v896_v14 = vpop.permute.xlu2 %895  ;;  %v1507_v38 = vld [vmem:[#allocation2 + $0x1b8] sm:$0xff] }
 0x18b   : > { %938 = vst.msk [vmem:[#allocation2 + $0x1b0] sm:$0xff] %vm526_vm2, %v896_v14  ;;  %v758_v16 = vpop.permute.xlu1 %757  ;;  %v628_v17 = vpop.permute.xlu0 %627  ;;  %1936 = vmatpush.xpose.msk.msrb.mxu0 %vm526_vm2, %v1511_v15  ;;  %v1353_v50 = vld [vmem:[#allocation2 + $0x118] sm:$0xff] }
 0x18c   : > { %804 = vst.msk [vmem:[#allocation2 + $0x110] sm:$0xff] %vm526_vm2, %v758_v16  ;;  %1922 = vmatpush.xpose.msk.msrb.mxu2 %vm526_vm2, %v1358_v18  ;;  %v1203_v52 = vld [vmem:[#allocation2 + $0x98] sm:$0xff] }
 0x18d   : > { %674 = vst.msk [vmem:[#allocation2 + $0x90] sm:$0xff] %vm526_vm2, %v628_v17  ;;  %1905 = vmatpush.xpose.msk.msra.mxu1 %vm526_vm2, %v1208_v19  ;;  %v1046_v19 = vlaneseq }
 0x18f   : > { %1937 = vmatpush.xpose.msk.msrb.mxu0 %vm526_vm2, %v1510_v20 }
 0x190   : > { %1923 = vmatpush.xpose.msk.msrb.mxu2 %vm526_vm2, %v1357_v21  ;;  %704 = vrot.lane.b32.xlu2 %v2422_v47, %s2165_s28 }
 0x191   : > { %1906 = vmatpush.xpose.msk.msra.mxu1 %vm526_vm2, %v1207_v22  ;;  %714 = vrot.lane.b32.xlu1 %v2477_v59, %s2165_s28  ;;  %v1508_v59 = vld [vmem:[#allocation2 + $0x1c0] sm:$0xff] }
 0x192   : > { %836 = vrot.lane.b32.xlu0 %v2431_v49, %s2164_s26  ;;  %v894_v23 = vpop.permute.xlu2 %893  ;;  %v1506_v48 = vld [vmem:[#allocation2 + $0x1b0] sm:$0xff] }
 0x193   : > { %937 = vst.msk [vmem:[#allocation2 + $0x1a8] sm:$0xff] %vm526_vm2, %v894_v23  ;;  %v756_v26 = vpop.permute.xlu1 %755  ;;  %v626_v28 = vpop.permute.xlu0 %625  ;;  %1938 = vmatpush.xpose.msk.msrb.mxu0 %vm526_vm2, %v1509_v24  ;;  %v1352_v60 = vld [vmem:[#allocation2 + $0x110] sm:$0xff] }
 0x194   : > { %803 = vst.msk [vmem:[#allocation2 + $0x108] sm:$0xff] %vm526_vm2, %v756_v26  ;;  %1924 = vmatpush.xpose.msk.msrb.mxu2 %vm526_vm2, %v1356_v30  ;;  %v1202_v61 = vld [vmem:[#allocation2 + $0x90] sm:$0xff] }
 0x195   : > { %673 = vst.msk [vmem:[#allocation2 + $0x88] sm:$0xff] %vm526_vm2, %v626_v28  ;;  %1907 = vmatpush.xpose.msk.msra.mxu1 %vm526_vm2, %v1206_v32 }
 0x197   : > { %1939 = vmatpush.xpose.msk.msrb.mxu0 %vm526_vm2, %v1508_v59 }
 0x198   : > { %1925 = vmatpush.xpose.msk.msrb.mxu2 %vm526_vm2, %v1355_v34  ;;  %702 = vrot.lane.b32.xlu2 %v2413_v45, %s2165_s28 }
 0x199   : > { %1908 = vmatpush.xpose.msk.msra.mxu1 %vm526_vm2, %v1205_v35  ;;  %708 = vrot.lane.b32.xlu1 %v2442_v51, %s2165_s28 }
 0x19a   : > { %696 = vrot.lane.b32.xlu0 %v2390_v39, %s2165_s28  ;;  %v892_v36 = vpop.permute.xlu2 %891  ;;  %v1505_v55 = vld [vmem:[#allocation2 + $0x1a8] sm:$0xff] }
 0x19b   : > { %936 = vst.msk [vmem:[#allocation2 + $0x1a0] sm:$0xff] %vm526_vm2, %v892_v36  ;;  %v754_v40 = vpop.permute.xlu1 %753  ;;  %v624_v42 = vpop.permute.xlu0 %623  ;;  %1940 = vmatpush.xpose.msk.msrb.mxu0 %vm526_vm2, %v1507_v38  ;;  %v1351_v63 = vld [vmem:[#allocation2 + $0x108] sm:$0xff] }
 0x19c   : > { %802 = vst.msk [vmem:[#allocation2 + $0x100] sm:$0xff] %vm526_vm2, %v754_v40  ;;  %1926 = vmatpush.xpose.msk.msrb.mxu2 %vm526_vm2, %v1354_v44  ;;  %v1201_v31 = vld [vmem:[#allocation2 + $0x88] sm:$0xff] }
 0x19d   : > { %672 = vst.msk [vmem:[#allocation2 + $0x80] sm:$0xff] %vm526_vm2, %v624_v42  ;;  %1909 = vmatpush.xpose.msk.msra.mxu1 %vm526_vm2, %v1204_v46 }
 0x19f   : > { %1941 = vmatpush.xpose.msk.msrb.mxu0 %vm526_vm2, %v1506_v48 }
 0x1a0   : > { %1927 = vmatpush.xpose.msk.msrb.mxu2 %vm526_vm2, %v1353_v50  ;;  %700 = vrot.lane.b32.xlu2 %v2404_v43, %s2165_s28 }
 0x1a1   : > { %1910 = vmatpush.xpose.msk.msra.mxu1 %vm526_vm2, %v1203_v52  ;;  %706 = vrot.lane.b32.xlu1 %v2431_v49, %s2165_s28 }
 0x1a2   : > { %970 = vrot.lane.b32.xlu0 %v2453_v53, %s2166_s29  ;;  %v890_v54 = vpop.permute.xlu2 %889  ;;  %v1504_v62 = vld [vmem:[#allocation2 + $0x1a0] sm:$0xff] }
 0x1a3   : > { %935 = vst.msk [vmem:[#allocation2 + $0x198] sm:$0xff] %vm526_vm2, %v890_v54  ;;  %v886_v57 = vpop.permute.xlu1 %885  ;;  %v888_v58 = vpop.permute.xlu0 %887  ;;  %1942 = vmatpush.xpose.msk.msrb.mxu0 %vm526_vm2, %v1505_v55  ;;  %v1350_v4 = vld [vmem:[#allocation2 + $0x100] sm:$0xff] }
 0x1a4   : > { %933 = vst.msk [vmem:[#allocation2 + $0x188] sm:$0xff] %vm526_vm2, %v886_v57  ;;  %1928 = vmatpush.xpose.msk.msrb.mxu2 %vm526_vm2, %v1352_v60  ;;  %v1200_v5 = vld [vmem:[#allocation2 + $0x80] sm:$0xff] }
 0x1a5   : > { %934 = vst.msk [vmem:[#allocation2 + $0x190] sm:$0xff] %vm526_vm2, %v888_v58  ;;  %1911 = vmatpush.xpose.msk.msra.mxu1 %vm526_vm2, %v1202_v61 }
 0x1a7   : > { %1943 = vmatpush.xpose.msk.msrb.mxu0 %vm526_vm2, %v1504_v62 }
 0x1a8   : > { %1929 = vmatpush.xpose.msk.msrb.mxu2 %vm526_vm2, %v1351_v63  ;;  %966 = vrot.lane.b32.xlu2 %v2431_v49, %s2166_s29 }
 0x1a9   : > { %1912 = vmatpush.xpose.msk.msra.mxu1 %vm526_vm2, %v1201_v31  ;;  %842 = vrot.lane.b32.xlu1 %v2465_v56, %s2164_s26 }
 0x1aa   : > { %832 = vrot.lane.b32.xlu0 %v2413_v45, %s2164_s26  ;;  %v1217_v0 = vpop.permute.xlu2 %1216  ;;  %v1503_v1 = vld [vmem:[#allocation2 + $0x198] sm:$0xff] }
 0x1ab   : > { %v884_v2 = vpop.permute.xlu1 %883  ;;  %v1367_v3 = vpop.permute.xlu0 %1366  ;;  %1944 = vmatpush.xpose.msk.msrb.mxu0 %vm526_vm2, %v1503_v1  ;;  %v1501_v6 = vld [vmem:[#allocation2 + $0x188] sm:$0xff] }
 0x1ac   : > { %932 = vst.msk [vmem:[#allocation2 + $0x180] sm:$0xff] %vm526_vm2, %v884_v2  ;;  %1930 = vmatpush.xpose.msk.msrb.mxu2 %vm526_vm2, %v1350_v4  ;;  %v1502_v49 = vld [vmem:[#allocation2 + $0x190] sm:$0xff] }
 0x1ad   : > { %1913 = vmatpush.xpose.msk.msra.mxu1 %vm526_vm2, %v1200_v5 }
 0x1af   : > { %1931 = vmatmul.msk.f32.vlgmr.msrb.gmra.mxu2 %vm526_vm2, %v1367_v3  ;;  %1945 = vmatpush.xpose.msk.msrb.mxu0 %vm526_vm2, %v1502_v49 }
 0x1b0   : > { %688 = vrot.lane.b32.xlu2 %v2346_v25, %s2165_s28  ;;  %1914 = vmatmul.msk.f32.vlgmr.msra.gmra.mxu1 %vm526_vm2, %v1217_v0 }
 0x1b1   : > { %840 = vrot.lane.b32.xlu1 %v2453_v53, %s2164_s26 }
 0x1b2   : > { %692 = vrot.lane.b32.xlu0 %v2376_v33, %s2165_s28  ;;  %v1517_v27 = vpop.permute.xlu2 %1516 }
 0x1b3   : > { %v582_v7 = vpop.permute.xlu1 %581  ;;  %v588_v8 = vpop.permute.xlu0 %587  ;;  %1946 = vmatpush.xpose.msk.msrb.mxu0 %vm526_vm2, %v1501_v6  ;;  %v1500_v9 = vld [vmem:[#allocation2 + $0x180] sm:$0xff] }
 0x1b4   : > { %618 = vst.msk [vmem:[#allocation3 + $0x58] sm:$0xff] %vm526_vm2, %v582_v7 }
 0x1b5   : > { %621 = vst.msk [vmem:[#allocation3 + $0x70] sm:$0xff] %vm526_vm2, %v588_v8 }
 0x1b7   : > { %1947 = vmatpush.xpose.msk.msrb.mxu0 %vm526_vm2, %v1500_v9 }
 0x1b8   : > { %962 = vrot.lane.b32.xlu2 %v2413_v45, %s2166_s29 }
 0x1b9   : > { %838 = vrot.lane.b32.xlu1 %v2442_v51, %s2164_s26 }
 0x1ba   : > { %1948 = vmatmul.msk.f32.vlgmr.msrb.gmra.mxu0 %vm526_vm2, %v1517_v27  ;;  %v590_v53 = vpop.permute.xlu2 %589 }
 0x1bb   : > { %v578_v10 = vpop.permute.xlu1 %577  ;;  %v566_v11 = vpop.permute.xlu0 %565  ;;  %622 = vst.msk [vmem:[#allocation3 + $0x78] sm:$0xff] %vm526_vm2, %v590_v53  ;;  %v1174_v61 = vld [vmem:[#allocation3 + $0x58] sm:$0xff] }
 0x1bc   : > { %616 = vst.msk [vmem:[#allocation3 + $0x48] sm:$0xff] %vm526_vm2, %v578_v10  ;;  %v1177_v15 = vld [vmem:[#allocation3 + $0x70] sm:$0xff] }
 0x1bd   : > { %610 = vst.msk [vmem:[#allocation3 + $0x18] sm:$0xff] %vm526_vm2, %v566_v11 }
 0x1c0   : > { %960 = vrot.lane.b32.xlu2 %v2404_v43, %s2166_s29 }
 0x1c1   : > { %698 = vrot.lane.b32.xlu1 %v2395_v41, %s2165_s28 }
 0x1c2   : > { %v584_v45 = vpop.permute.xlu2 %583  ;;  %v1178_v12 = vld [vmem:[#allocation3 + $0x78] sm:$0xff] }
 0x1c3   : > { %v574_v13 = vpop.permute.xlu1 %573  ;;  %v562_v14 = vpop.permute.xlu0 %561  ;;  %619 = vst.msk [vmem:[#allocation3 + $0x60] sm:$0xff] %vm526_vm2, %v584_v45  ;;  %1179 = vmatpush.msra.mxu3 %v1178_v12  ;;  %v1172_v31 = vld [vmem:[#allocation3 + $0x48] sm:$0xff] }
 0x1c4   : > { %614 = vst.msk [vmem:[#allocation3 + $0x38] sm:$0xff] %vm526_vm2, %v574_v13  ;;  %v1166_v7 = vld [vmem:[#allocation3 + $0x18] sm:$0xff] }
 0x1c5   : > { %608 = vst.msk [vmem:[#allocation3 + $0x8] sm:$0xff] %vm526_vm2, %v562_v14  ;;  %1180 = vmatpush.msra.mxu3 %v1177_v15 }
 0x1c9   : > { %972 = vrot.lane.b32.xlu1 %v2465_v56, %s2166_s29  ;;  %v2750_v56 = vand.u32 127, %v1046_v19 }
 0x1ca   : > { %v580_v16 = vpop.permute.xlu2 %579  ;;  %v1134_v23 = vpop.f32.mrf.mxu2  ;;  %v1175_v60 = vld [vmem:[#allocation3 + $0x60] sm:$0xff] }
 0x1cb   : > { %v570_v17 = vpop.permute.xlu1 %569  ;;  %v560_v18 = vpop.permute.xlu0 %559  ;;  %617 = vst.msk [vmem:[#allocation3 + $0x50] sm:$0xff] %vm526_vm2, %v580_v16  ;;  %vm1048_vm3 = vcmp.lt.s32.totalorder %v2750_v56, 8  ;;  %v1170_v2 = vld [vmem:[#allocation3 + $0x38] sm:$0xff] }
 0x1cc   : > { %612 = vst.msk [vmem:[#allocation3 + $0x28] sm:$0xff] %vm526_vm2, %v570_v17  ;;  %v2759_v30 = vsel %vm1048_vm3, %v1134_v23, -1e+30  ;;  %v1164_v10 = vld [vmem:[#allocation3 + $0x8] sm:$0xff] }
 0x1cd   : > { %607 = vst.msk [vmem:[#allocation3] sm:$0xff] %vm526_vm2, %v560_v18 }
 0x1d1   : > { %834 = vrot.lane.b32.xlu1 %v2422_v47, %s2164_s26 }
 0x1d2   : > { %v576_v20 = vpop.permute.xlu2 %575 }
 0x1d3   : > { %v568_v21 = vpop.permute.xlu1 %567  ;;  %v849_v22 = vpop.permute.xlu0 %848  ;;  %615 = vst.msk [vmem:[#allocation3 + $0x40] sm:$0xff] %vm526_vm2, %v576_v20  ;;  %v1168_v49 = vld [vmem:[#allocation3 + $0x28] sm:$0xff] }
 0x1d4   : > { %611 = vst.msk [vmem:[#allocation3 + $0x20] sm:$0xff] %vm526_vm2, %v568_v21  ;;  %v1163_v45 = vld [vmem:[#allocation3] sm:$0xff] }
 0x1d5   : > { %882 = vst.msk [vmem:[#allocation3 + $0x178] sm:$0xff] %vm526_vm2, %v849_v22 }
 0x1d9   : > { %694 = vrot.lane.b32.xlu1 %v2385_v37, %s2165_s28 }
 0x1da   : > { %v572_v24 = vpop.permute.xlu2 %571  ;;  %v1171_v1 = vld [vmem:[#allocation3 + $0x40] sm:$0xff] }
 0x1db   : > { %v719_v26 = vpop.permute.xlu1 %718  ;;  %v847_v28 = vpop.permute.xlu0 %846  ;;  %613 = vst.msk [vmem:[#allocation3 + $0x30] sm:$0xff] %vm526_vm2, %v572_v24  ;;  %v1167_v6 = vld [vmem:[#allocation3 + $0x20] sm:$0xff] }
 0x1dc   : > { %752 = vst.msk [vmem:[#allocation3 + $0xf8] sm:$0xff] %vm526_vm2, %v719_v26  ;;  %1140 = vmax.xlane.f32.xlu0 %v2759_v30 }
 0x1dd   : > { %881 = vst.msk [vmem:[#allocation3 + $0x170] sm:$0xff] %vm526_vm2, %v847_v28 }
 0x1e1   : > { %968 = vrot.lane.b32.xlu1 %v2442_v51, %s2166_s29 }
 0x1e2   : > { %v713_v32 = vpop.permute.xlu2 %712  ;;  %v1169_v3 = vld [vmem:[#allocation3 + $0x30] sm:$0xff] }
 0x1e3   : > { %v564_v59 = vpop.permute.xlu1 %563  ;;  %v979_v34 = vpop.permute.xlu0 %978  ;;  %749 = vst.msk [vmem:[#allocation3 + $0xe0] sm:$0xff] %vm526_vm2, %v713_v32  ;;  %v1328_v12 = vld [vmem:[#allocation3 + $0xf8] sm:$0xff] }
 0x1e4   : > { %609 = vst.msk [vmem:[#allocation3 + $0x10] sm:$0xff] %vm526_vm2, %v564_v59 }
 0x1e5   : > { %1012 = vst.msk [vmem:[#allocation3 + $0x1f8] sm:$0xff] %vm526_vm2, %v979_v34 }
 0x1e9   : > { %830 = vrot.lane.b32.xlu1 %v2404_v43, %s2164_s26 }
 0x1ea   : > { %v705_v35 = vpop.permute.xlu2 %704  ;;  %v1325_v17 = vld [vmem:[#allocation3 + $0xe0] sm:$0xff] }
 0x1eb   : > { %v717_v36 = vpop.permute.xlu1 %716  ;;  %v977_v38 = vpop.permute.xlu0 %976  ;;  %745 = vst.msk [vmem:[#allocation3 + $0xc0] sm:$0xff] %vm526_vm2, %v705_v35  ;;  %v1165_v8 = vld [vmem:[#allocation3 + $0x10] sm:$0xff] }
 0x1ec   : > { %751 = vst.msk [vmem:[#allocation3 + $0xf0] sm:$0xff] %vm526_vm2, %v717_v36  ;;  %v1628_v51 = vld [vmem:[#allocation3 + $0x1f8] sm:$0xff] }
 0x1ed   : > { %1011 = vst.msk [vmem:[#allocation3 + $0x1f0] sm:$0xff] %vm526_vm2, %v977_v38  ;;  %1629 = vmatpush.msrb.mxu1 %v1628_v51 }
 0x1f0   : > { %822 = vrot.lane.b32.xlu0 %v2376_v33, %s2164_s26 }
 0x1f1   : > { %690 = vrot.lane.b32.xlu1 %v2360_v29, %s2165_s28 }
 0x1f2   : > { %v703_v40 = vpop.permute.xlu2 %702  ;;  %v1321_v22 = vld [vmem:[#allocation3 + $0xc0] sm:$0xff] }
 0x1f3   : > { %v711_v42 = vpop.permute.xlu1 %710  ;;  %744 = vst.msk [vmem:[#allocation3 + $0xb8] sm:$0xff] %vm526_vm2, %v703_v40  ;;  %v1327_v13 = vld [vmem:[#allocation3 + $0xf0] sm:$0xff] }
 0x1f4   : > { %748 = vst.msk [vmem:[#allocation3 + $0xd8] sm:$0xff] %vm526_vm2, %v711_v42  ;;  %v845_v43 = vpop.permute.xlu0 %844  ;;  %v1627_v44 = vld [vmem:[#allocation3 + $0x1f0] sm:$0xff] }
 0x1f5   : > { %880 = vst.msk [vmem:[#allocation3 + $0x168] sm:$0xff] %vm526_vm2, %v845_v43  ;;  %1630 = vmatpush.msrb.mxu1 %v1627_v44 }
 0x1f9   : > { %828 = vrot.lane.b32.xlu1 %v2395_v41, %s2164_s26 }
 0x1fa   : > { %v701_v46 = vpop.permute.xlu2 %700  ;;  %v1320_v23 = vld [vmem:[#allocation3 + $0xb8] sm:$0xff] }
 0x1fb   : > { %v586_v48 = vpop.permute.xlu1 %585  ;;  %743 = vst.msk [vmem:[#allocation3 + $0xb0] sm:$0xff] %vm526_vm2, %v701_v46  ;;  %v1324_v18 = vld [vmem:[#allocation3 + $0xd8] sm:$0xff] }
 0x1fc   : > { %620 = vst.msk [vmem:[#allocation3 + $0x68] sm:$0xff] %vm526_vm2, %v586_v48  ;;  %v975_v50 = vpop.permute.xlu0 %974 }
 0x1fd   : > { %1010 = vst.msk [vmem:[#allocation3 + $0x1e8] sm:$0xff] %vm526_vm2, %v975_v50 }
 0x201   : > { %964 = vrot.lane.b32.xlu1 %v2422_v47, %s2166_s29  ;;  %v1173_v47 = vld [vmem:[#allocation3 + $0x50] sm:$0xff] }
 0x202   : > { %v967_v52 = vpop.permute.xlu2 %966  ;;  %v1319_v26 = vld [vmem:[#allocation3 + $0xb0] sm:$0xff] }
 0x203   : > { %v715_v54 = vpop.permute.xlu1 %714  ;;  %1006 = vst.msk [vmem:[#allocation3 + $0x1c8] sm:$0xff] %vm526_vm2, %v967_v52  ;;  %v1176_v55 = vld [vmem:[#allocation3 + $0x68] sm:$0xff] }
 0x204   : > { %750 = vst.msk [vmem:[#allocation3 + $0xe8] sm:$0xff] %vm526_vm2, %v715_v54  ;;  %v837_v57 = vpop.permute.xlu0 %836  ;;  %1181 = vmatpush.msra.mxu3 %v1176_v55  ;;  %v1626_v58 = vld [vmem:[#allocation3 + $0x1e8] sm:$0xff] }
 0x205   : > { %876 = vst.msk [vmem:[#allocation3 + $0x148] sm:$0xff] %vm526_vm2, %v837_v57  ;;  %1631 = vmatpush.msrb.mxu1 %v1626_v58 }
 0x206   : > { %1182 = vmatpush.msra.mxu3 %v1175_v60 }
 0x208   : > { %1183 = vmatpush.msra.mxu3 %v1174_v61 }
 0x209   : > { %826 = vrot.lane.b32.xlu1 %v2390_v39, %s2164_s26 }
 0x20a   : > { %1184 = vmatpush.msra.mxu3 %v1173_v47  ;;  %v689_v62 = vpop.permute.xlu2 %688 }
 0x20b   : > { %v709_v63 = vpop.permute.xlu1 %708  ;;  %737 = vst.msk [vmem:[#allocation3 + $0x80] sm:$0xff] %vm526_vm2, %v689_v62  ;;  %v1326_v14 = vld [vmem:[#allocation3 + $0xe8] sm:$0xff] }
 0x20c   : > { %747 = vst.msk [vmem:[#allocation3 + $0xd0] sm:$0xff] %vm526_vm2, %v709_v63  ;;  %v697_v0 = vpop.permute.xlu0 %696  ;;  %1185 = vmatpush.msra.mxu3 %v1172_v31 }
 0x20d   : > { %741 = vst.msk [vmem:[#allocation3 + $0xa0] sm:$0xff] %vm526_vm2, %v697_v0 }
 0x20e   : > { %1186 = vmatpush.msra.mxu3 %v1171_v1 }
 0x210   : > { %1187 = vmatpush.msra.mxu3 %v1170_v2 }
 0x212   : > { %1188 = vmatpush.msra.mxu3 %v1169_v3  ;;  %v963_v4 = vpop.permute.xlu2 %962  ;;  %v1313_v62 = vld [vmem:[#allocation3 + $0x80] sm:$0xff] }
 0x213   : > { %v707_v5 = vpop.permute.xlu1 %706  ;;  %1004 = vst.msk [vmem:[#allocation3 + $0x1b8] sm:$0xff] %vm526_vm2, %v963_v4  ;;  %v1323_v19 = vld [vmem:[#allocation3 + $0xd0] sm:$0xff] }
 0x214   : > { %746 = vst.msk [vmem:[#allocation3 + $0xc8] sm:$0xff] %vm526_vm2, %v707_v5  ;;  %v971_v27 = vpop.permute.xlu0 %970  ;;  %1189 = vmatpush.msra.mxu3 %v1168_v49  ;;  %v1317_v40 = vld [vmem:[#allocation3 + $0xa0] sm:$0xff] }
 0x215   : > { %1008 = vst.msk [vmem:[#allocation3 + $0x1d8] sm:$0xff] %vm526_vm2, %v971_v27 }
 0x216   : > { %1190 = vmatpush.msra.mxu3 %v1167_v6 }
 0x218   : > { %1191 = vmatpush.msra.mxu3 %v1166_v7 }
 0x21a   : > { %1192 = vmatpush.msra.mxu3 %v1165_v8  ;;  %v961_v9 = vpop.permute.xlu2 %960  ;;  %v1620_v1 = vld [vmem:[#allocation3 + $0x1b8] sm:$0xff] }
 0x21b   : > { %v843_v53 = vpop.permute.xlu1 %842  ;;  %1003 = vst.msk [vmem:[#allocation3 + $0x1b0] sm:$0xff] %vm526_vm2, %v961_v9  ;;  %v1322_v20 = vld [vmem:[#allocation3 + $0xc8] sm:$0xff] }
 0x21c   : > { %879 = vst.msk [vmem:[#allocation3 + $0x160] sm:$0xff] %vm526_vm2, %v843_v53  ;;  %v833_v11 = vpop.permute.xlu0 %832  ;;  %1193 = vmatpush.msra.mxu3 %v1164_v10  ;;  %v1624_v44 = vld [vmem:[#allocation3 + $0x1d8] sm:$0xff] }
 0x21d   : > { %874 = vst.msk [vmem:[#allocation3 + $0x138] sm:$0xff] %vm526_vm2, %v833_v11 }
 0x21e   : > { %1194 = vmatpush.msra.mxu3 %v1163_v45 }
 0x220   : > { %1329 = vmatpush.msrb.mxu3 %v1328_v12 }
 0x222   : > { %1330 = vmatpush.msrb.mxu3 %v1327_v13  ;;  %v1619_v2 = vld [vmem:[#allocation3 + $0x1b0] sm:$0xff] }
 0x223   : > { %v841_v15 = vpop.permute.xlu1 %840 }
 0x224   : > { %1331 = vmatpush.msrb.mxu3 %v1326_v14  ;;  %878 = vst.msk [vmem:[#allocation3 + $0x158] sm:$0xff] %vm526_vm2, %v841_v15  ;;  %v693_v16 = vpop.permute.xlu0 %692 }
 0x225   : > { %739 = vst.msk [vmem:[#allocation3 + $0x90] sm:$0xff] %vm526_vm2, %v693_v16 }
 0x226   : > { %1332 = vmatpush.msrb.mxu3 %v1325_v17 }
 0x228   : > { %1333 = vmatpush.msrb.mxu3 %v1324_v18 }
 0x22a   : > { %1334 = vmatpush.msrb.mxu3 %v1323_v19 }
 0x22b   : > { %v839_v21 = vpop.permute.xlu1 %838 }
 0x22c   : > { %1335 = vmatpush.msrb.mxu3 %v1322_v20  ;;  %877 = vst.msk [vmem:[#allocation3 + $0x150] sm:$0xff] %vm526_vm2, %v839_v21  ;;  %v1315_v55 = vld [vmem:[#allocation3 + $0x90] sm:$0xff] }
 0x22d   : > { %v1285_v24 = vpop.f32.mrf.mxu1 }
 0x22e   : > { %1336 = vmatpush.msrb.mxu3 %v1321_v22  ;;  %v2807_v32 = vsel %vm1048_vm3, %v1285_v24, -1e+30 }
 0x230   : > { %1337 = vmatpush.msrb.mxu3 %v1320_v23 }
 0x232   : > { %1338 = vmatpush.msrb.mxu3 %v1319_v26  ;;  %v1435_v28 = vpop.f32.mrf.mxu2  ;;  %v1477_v26 = vld [vmem:[#allocation3 + $0x170] sm:$0xff] }
 0x233   : > { %v699_v59 = vpop.permute.xlu1 %698  ;;  %1289 = vmax.xlane.f32.xlu1 %v2807_v32  ;;  %v2812_v34 = vsel %vm1048_vm3, %v1435_v28, -1e+30  ;;  %v1476_v28 = vld [vmem:[#allocation3 + $0x168] sm:$0xff] }
 0x234   : > { %742 = vst.msk [vmem:[#allocation3 + $0xa8] sm:$0xff] %vm526_vm2, %v699_v59  ;;  %1439 = vmax.xlane.f32.xlu2 %v2812_v34  ;;  %v1474_v59 = vld [vmem:[#allocation3 + $0x158] sm:$0xff] }
 0x237   : > { %v1585_v35 = vpop.f32.mrf.mxu0 }
 0x238   : > { %v2818_v36 = vsel %vm1048_vm3, %v1585_v35, -1e+30  ;;  %v1472_v35 = vld [vmem:[#allocation3 + $0x148] sm:$0xff] }
 0x239   : > { %1589 = vmax.xlane.f32.xlu0 %v2818_v36 }
 0x23b   : > { %v973_v38 = vpop.permute.xlu1 %972  ;;  %v1318_v51 = vld [vmem:[#allocation3 + $0xa8] sm:$0xff] }
 0x23c   : > { %1009 = vst.msk [vmem:[#allocation3 + $0x1e0] sm:$0xff] %vm526_vm2, %v973_v38  ;;  %1339 = vmatpush.msrb.mxu3 %v1318_v51  ;;  %v1470_v38 = vld [vmem:[#allocation3 + $0x138] sm:$0xff] }
 0x23e   : > { %1340 = vmatpush.msrb.mxu3 %v1317_v40 }
 0x243   : > { %v835_v42 = vpop.permute.xlu1 %834  ;;  %v1625_v43 = vld [vmem:[#allocation3 + $0x1e0] sm:$0xff] }
 0x244   : > { %875 = vst.msk [vmem:[#allocation3 + $0x140] sm:$0xff] %vm526_vm2, %v835_v42  ;;  %1632 = vmatpush.msrb.mxu1 %v1625_v43 }
 0x246   : > { %1633 = vmatpush.msrb.mxu1 %v1624_v44 }
 0x24b   : > { %v695_v46 = vpop.permute.xlu1 %694 }
 0x24c   : > { %740 = vst.msk [vmem:[#allocation3 + $0x98] sm:$0xff] %vm526_vm2, %v695_v46  ;;  %824 = vrot.lane.b32.xlu1 %v2385_v37, %s2164_s26 }
 0x24d   : > { %956 = vrot.lane.b32.xlu0 %v2390_v39, %s2166_s29 }
 0x24f   : > { %v1141_v56 = vpop.xlane.xlu0 %1140 }
 0x250   : > { %v1142_v48 = vsub.f32 %v2759_v30, %v1141_v56  ;;  %v1622_v30 = vld [vmem:[#allocation3 + $0x1c8] sm:$0xff] }
 0x252   : > { %v1143_v50 = vmul.f32 1.442695, %v1142_v48 }
 0x253   : > { %v969_v52 = vpop.permute.xlu1 %968  ;;  %v1316_v54 = vld [vmem:[#allocation3 + $0x98] sm:$0xff] }
 0x254   : > { %2032 = vpow2.f32 %v1143_v50  ;;  %1007 = vst.msk [vmem:[#allocation3 + $0x1d0] sm:$0xff] %vm526_vm2, %v969_v52  ;;  %1341 = vmatpush.msrb.mxu3 %v1316_v54 }
 0x255   : > { %954 = vrot.lane.b32.xlu0 %v2385_v37, %s2166_s29 }
 0x256   : > { %1342 = vmatpush.msrb.mxu3 %v1315_v55 }
 0x25a   : > { %v2832_v57 = vpop.eup %2032 }
 0x25b   : > { %1145 = vadd.xlane.f32.xlu2 %v2832_v57  ;;  %v831_v39 = vpop.permute.xlu1 %830  ;;  %v1623_v58 = vld [vmem:[#allocation3 + $0x1d0] sm:$0xff] }
 0x25c   : > { %873 = vst.msk [vmem:[#allocation3 + $0x130] sm:$0xff] %vm526_vm2, %v831_v39  ;;  %1634 = vmatpush.msrb.mxu1 %v1623_v58 }
 0x25e   : > { %1635 = vmatpush.msrb.mxu1 %v1622_v30 }
 0x262   : > { %v823_v60 = vpop.permute.xlu0 %822 }
 0x263   : > { %869 = vst.msk [vmem:[#allocation3 + $0x110] sm:$0xff] %vm526_vm2, %v823_v60  ;;  %v691_v61 = vpop.permute.xlu1 %690 }
 0x264   : > { %738 = vst.msk [vmem:[#allocation3 + $0x88] sm:$0xff] %vm526_vm2, %v691_v61 }
 0x26a   : > { %v1465_v43 = vld [vmem:[#allocation3 + $0x110] sm:$0xff] }
 0x26b   : > { %v829_v47 = vpop.permute.xlu1 %828  ;;  %v1314_v37 = vld [vmem:[#allocation3 + $0x88] sm:$0xff] }
 0x26c   : > { %872 = vst.msk [vmem:[#allocation3 + $0x128] sm:$0xff] %vm526_vm2, %v829_v47  ;;  %1343 = vmatpush.msrb.mxu3 %v1314_v37 }
 0x26e   : > { %1344 = vmatpush.msrb.mxu3 %v1313_v62 }
 0x273   : > { %v965_v63 = vpop.permute.xlu1 %964  ;;  %v1468_v51 = vld [vmem:[#allocation3 + $0x128] sm:$0xff] }
 0x274   : > { %1005 = vst.msk [vmem:[#allocation3 + $0x1c0] sm:$0xff] %vm526_vm2, %v965_v63 }
 0x27b   : > { %v827_v31 = vpop.permute.xlu1 %826  ;;  %v1621_v0 = vld [vmem:[#allocation3 + $0x1c0] sm:$0xff] }
 0x27c   : > { %871 = vst.msk [vmem:[#allocation3 + $0x120] sm:$0xff] %vm526_vm2, %v827_v31  ;;  %1636 = vmatpush.msrb.mxu1 %v1621_v0 }
 0x27e   : > { %1637 = vmatpush.msrb.mxu1 %v1620_v1 }
 0x280   : > { %1638 = vmatpush.msrb.mxu1 %v1619_v2 }
 0x283   : > { %v1467_v40 = vld [vmem:[#allocation3 + $0x120] sm:$0xff] }
 0x2a6   : > { %v1290_v3 = vpop.xlane.xlu1 %1289 }
 0x2a7   : > { %v1291_v4 = vsub.f32 %v2807_v32, %v1290_v3  ;;  %v1440_v5 = vpop.xlane.xlu2 %1439  ;;  %v1475_v32 = vld [vmem:[#allocation3 + $0x160] sm:$0xff] }
 0x2a8   : > { %v1441_v49 = vsub.f32 %v2812_v34, %v1440_v5  ;;  %v1473_v34 = vld [vmem:[#allocation3 + $0x150] sm:$0xff] }
 0x2a9   : > { %v1292_v27 = vmul.f32 1.442695, %v1291_v4 }
 0x2aa   : > { %v1442_v6 = vmul.f32 1.442695, %v1441_v49 }
 0x2ab   : > { %2034 = vpow2.f32 %v1292_v27 }
 0x2ac   : > { %2036 = vpow2.f32 %v1442_v6  ;;  %v1590_v7 = vpop.xlane.xlu0 %1589 }
 0x2ad   : > { %v1591_v8 = vsub.f32 %v2818_v36, %v1590_v7  ;;  %v1471_v36 = vld [vmem:[#allocation3 + $0x140] sm:$0xff] }
 0x2af   : > { %v1592_v9 = vmul.f32 1.442695, %v1591_v8 }
 0x2b1   : > { %v2844_v53 = vpop.eup %2034  ;;  %2038 = vpow2.f32 %v1592_v9 }
 0x2b2   : > { %v2846_v10 = vpop.eup %2036  ;;  %1294 = vadd.xlane.f32.xlu2 %v2844_v53 }
 0x2b3   : > { %1444 = vadd.xlane.f32.xlu0 %v2846_v10 }
 0x2b7   : > { %v2850_v11 = vpop.eup %2038 }
 0x2b8   : > { %1594 = vadd.xlane.f32.xlu1 %v2850_v11 }
 0x2be   : > { %v825_v45 = vpop.permute.xlu1 %824 }
 0x2bf   : > { %870 = vst.msk [vmem:[#allocation3 + $0x118] sm:$0xff] %vm526_vm2, %v825_v45  ;;  %v957_v12 = vpop.permute.xlu0 %956 }
 0x2c0   : > { %1001 = vst.msk [vmem:[#allocation3 + $0x1a0] sm:$0xff] %vm526_vm2, %v957_v12 }
 0x2c6   : > { %v1466_v42 = vld [vmem:[#allocation3 + $0x118] sm:$0xff] }
 0x2c7   : > { %950 = vrot.lane.b32.xlu0 %v2360_v29, %s2166_s29  ;;  %v955_v13 = vpop.permute.xlu0 %954  ;;  %v1617_v12 = vld [vmem:[#allocation3 + $0x1a0] sm:$0xff] }
 0x2c8   : > { %1000 = vst.msk [vmem:[#allocation3 + $0x198] sm:$0xff] %vm526_vm2, %v955_v13 }
 0x2ca   : > { %958 = vrot.lane.b32.xlu2 %v2395_v41, %s2166_s29 }
 0x2ce   : > { %v1146_v14 = vpop.xlane.xlu2 %1145 }
 0x2cf   : > { %2040 = vrcp.f32 %v1146_v14  ;;  %v1158_v18 = vand.u32 2147483648, %v1146_v14  ;;  %v1156_v20 = vand.u32 2147483647, %v1146_v14  ;;  %vm1152_vm5 = vweird.f32 %v1146_v14 }
 0x2d1   : > { %v1159_v22 = vor.u32 1.1754944e-38, %v1158_v18  ;;  %vm1157_vm7 = vcmp.eq.f32.partialorder %v1156_v20, 8.507059e+37  ;;  %v1616_v18 = vld [vmem:[#allocation3 + $0x198] sm:$0xff] }
 0x2d2   : > { %820 = vrot.lane.b32.xlu2 %v2360_v29, %s2164_s26  ;;  %v1478_v29 = vld [vmem:[#allocation3 + $0x178] sm:$0xff] }
 0x2d5   : > { %v2041_v15 = vpop.eup %2040 }
 0x2d6   : > { %v1148_v16 = vmul.f32 %v2041_v15, %v1146_v14  ;;  %vm1153_vm4 = vweird.f32 %v2041_v15 }
 0x2d7   : > { %vm1154_vm6 = vmor %vm1152_vm5, %vm1153_vm4 }
 0x2d8   : > { %v1149_v17 = vsub.f32 1.0, %v1148_v16 }
 0x2da   : > { %v1150_v19 = vmul.f32 %v2041_v15, %v1149_v17  ;;  %818 = vrot.lane.b32.xlu2 %v2346_v25, %s2164_s26  ;;  %s1706_s26 = scalar_lea.sflag [#allocation7], %s2891_s15 }
 0x2dc   : > { %v1151_v21 = vadd.f32 %v2041_v15, %v1150_v19 }
 0x2de   : > { %v1155_v41 = vsel %vm1154_vm6, %v2041_v15, %v1151_v21 }
 0x2df   : > { %v1160_v23 = vsel %vm1157_vm7, %v1159_v22, %v1155_v41  ;;  %vm1664_vm7 = vcmask 195584  }
 0x2e0   : > { %v2865_v24 = vmul.f32 %v2832_v57, %v1160_v23 }
 0x2e2   : > { %1195 = vmatmul.f32.vlgmr.msra.gmra.mxu3 %v2865_v24  ;;  %952 = vrot.lane.b32.xlu2 %v2376_v33, %s2166_s29  ;;  %v1469_v33 = vld [vmem:[#allocation3 + $0x130] sm:$0xff] }
 0x2e3   : > { %1479 = vmatpush.msra.mxu3 %v1478_v29 }
 0x2e5   : > { %1480 = vmatpush.msra.mxu3 %v1477_v26 }
 0x2e7   : > { %1481 = vmatpush.msra.mxu3 %v1476_v28 }
 0x2e9   : > { %1482 = vmatpush.msra.mxu3 %v1475_v32 }
 0x2ea   : > { %948 = vrot.lane.b32.xlu2 %v2346_v25, %s2166_s29 }
 0x2eb   : > { %1483 = vmatpush.msra.mxu3 %v1474_v59 }
 0x2ed   : > { %1484 = vmatpush.msra.mxu3 %v1473_v34 }
 0x2ef   : > { %1485 = vmatpush.msra.mxu3 %v1472_v35 }
 0x2f1   : > { %1486 = vmatpush.msra.mxu3 %v1471_v36 }
 0x2f3   : > { %1487 = vmatpush.msra.mxu3 %v1470_v38 }
 0x2f5   : > { %1488 = vmatpush.msra.mxu3 %v1469_v33 }
 0x2f7   : > { %1489 = vmatpush.msra.mxu3 %v1468_v51  ;;  %v1669_v51 = vld [vmem:[%s2982_s6 + $0x18] sm:$0xff] }
 0x2f9   : > { %1490 = vmatpush.msra.mxu3 %v1467_v40  ;;  %v1668_v40 = vld [vmem:[%s2982_s6 + $0x10] sm:$0xff] }
 0x2fb   : > { %1491 = vmatpush.msra.mxu3 %v1466_v42  ;;  %v1667_v42 = vld [vmem:[%s2982_s6 + $0x8] sm:$0xff] }
 0x2fd   : > { %1492 = vmatpush.msra.mxu3 %v1465_v43  ;;  %v1666_v43 = vld [vmem:[%s2982_s6] sm:$0xff] }
 0x325   : > { %v1295_v25 = vpop.xlane.xlu2 %1294 }
 0x326   : > { %2042 = vrcp.f32 %v1295_v25  ;;  %v1445_v44 = vpop.xlane.xlu0 %1444  ;;  %v1307_v57 = vand.u32 2147483648, %v1295_v25  ;;  %v1305_v58 = vand.u32 2147483647, %v1295_v25  ;;  %vm1301_vm10 = vweird.f32 %v1295_v25 }
 0x327   : > { %2044 = vrcp.f32 %v1445_v44  ;;  %v1455_v60 = vand.u32 2147483647, %v1445_v44  ;;  %v1457_v61 = vand.u32 2147483648, %v1445_v44  ;;  %vm1451_vm11 = vweird.f32 %v1445_v44 }
 0x328   : > { %v1308_v31 = vor.u32 1.1754944e-38, %v1307_v57  ;;  %vm1306_vm13 = vcmp.eq.f32.partialorder %v1305_v58, 8.507059e+37 }
 0x329   : > { %vm2877_vm15 = vcmp.eq.f32.partialorder %v1455_v60, 8.507059e+37  ;;  %v1458_v3 = vor.u32 1.1754944e-38, %v1457_v61 }
 0x32b   : > { %v1595_v46 = vpop.xlane.xlu1 %1594 }
 0x32c   : > { %v2043_v56 = vpop.eup %2042  ;;  %2046 = vrcp.f32 %v1595_v46  ;;  %v1605_v6 = vand.u32 2147483647, %v1595_v46  ;;  %v1607_v7 = vand.u32 2147483648, %v1595_v46  ;;  %vm1601_vm4 = vweird.f32 %v1595_v46 }
 0x32d   : > { %v2045_v48 = vpop.eup %2044  ;;  %v1297_v50 = vmul.f32 %v2043_v56, %v1295_v25  ;;  %v959_v52 = vpop.permute.xlu2 %958  ;;  %vm1302_vm8 = vweird.f32 %v2043_v56 }
 0x32e   : > { %v1447_v54 = vmul.f32 %v2045_v48, %v1445_v44  ;;  %1002 = vst.msk [vmem:[#allocation3 + $0x1a8] sm:$0xff] %vm526_vm2, %v959_v52  ;;  %vm1452_vm9 = vweird.f32 %v2045_v48  ;;  %vm1303_vm12 = vmor %vm1301_vm10, %vm1302_vm8  ;;  %v1608_v20 = vor.u32 1.1754944e-38, %v1607_v7  ;;  %vm1606_vm6 = vcmp.eq.f32.partialorder %v1605_v6, 8.507059e+37 }
 0x32f   : > { %v1298_v55 = vsub.f32 1.0, %v1297_v50  ;;  %vm2873_vm14 = vmor %vm1451_vm11, %vm1452_vm9 }
 0x330   : > { %v1448_v39 = vsub.f32 1.0, %v1447_v54 }
 0x331   : > { %v1299_v30 = vmul.f32 %v2043_v56, %v1298_v55 }
 0x332   : > { %v2047_v47 = vpop.eup %2046  ;;  %v1449_v37 = vmul.f32 %v2045_v48, %v1448_v39 }
 0x333   : > { %v1597_v62 = vmul.f32 %v2047_v47, %v1595_v46  ;;  %v1300_v63 = vadd.f32 %v2043_v56, %v1299_v30  ;;  %vm1602_vm3 = vweird.f32 %v2047_v47 }
 0x334   : > { %v1450_v0 = vadd.f32 %v2045_v48, %v1449_v37  ;;  %vm1603_vm5 = vmor %vm1601_vm4, %vm1602_vm3 }
 0x335   : > { %v1598_v4 = vsub.f32 1.0, %v1597_v62  ;;  %v821_v5 = vpop.permute.xlu2 %820  ;;  %v1618_v49 = vld [vmem:[#allocation3 + $0x1a8] sm:$0xff]  ;;  %v1304_v27 = vsel %vm1303_vm12, %v2043_v56, %v1300_v63 }
 0x336   : > { %868 = vst.msk [vmem:[#allocation3 + $0x108] sm:$0xff] %vm526_vm2, %v821_v5  ;;  %1639 = vmatpush.msrb.mxu1 %v1618_v49  ;;  %v1309_v8 = vsel %vm1306_vm13, %v1308_v31, %v1304_v27  ;;  %v1454_v9 = vsel %vm2873_vm14, %v2045_v48, %v1450_v0 }
 0x337   : > { %v1599_v45 = vmul.f32 %v2047_v47, %v1598_v4  ;;  %v1310_v13 = vmul.f32 %v2844_v53, %v1309_v8  ;;  %v1459_v14 = vsel %vm2877_vm15, %v1458_v3, %v1454_v9 }
 0x338   : > { %1640 = vmatpush.msrb.mxu1 %v1617_v12  ;;  %v1460_v19 = vmul.f32 %v2846_v10, %v1459_v14 }
 0x339   : > { %v1600_v15 = vadd.f32 %v2047_v47, %v1599_v45  ;;  %v1311_v16 = vadd.f32 %v1310_v13, %v2865_v24  ;;  %1345 = vmatmul.f32.vlgmr.msrb.gmra.mxu3 %v1310_v13  ;;  %v951_v17 = vpop.permute.xlu0 %950 }
 0x33a   : > { %998 = vst.msk [vmem:[#allocation3 + $0x188] sm:$0xff] %vm526_vm2, %v951_v17  ;;  %1641 = vmatpush.msrb.mxu1 %v1616_v18 }
 0x33b   : > { %v1604_v53 = vsel %vm1603_vm5, %v2047_v47, %v1600_v15  ;;  %v1461_v24 = vadd.f32 %v1460_v19, %v1311_v16 }
 0x33c   : > { %v1609_v21 = vsel %vm1606_vm6, %v1608_v20, %v1604_v53 }
 0x33d   : > { %v819_v22 = vpop.permute.xlu2 %818  ;;  %v1464_v41 = vld [vmem:[#allocation3 + $0x108] sm:$0xff]  ;;  %v1610_v23 = vmul.f32 %v2850_v11, %v1609_v21 }
 0x33e   : > { %867 = vst.msk [vmem:[#allocation3 + $0x100] sm:$0xff] %vm526_vm2, %v819_v22  ;;  %1493 = vmatpush.msra.mxu3 %v1464_v41 }
 0x33f   : > { %v1611_v10 = vadd.f32 %v1610_v23, %v1461_v24 }
 0x341   : > { %v1698_v29 = vmul.f32 0.25, %v1611_v10  ;;  %v1614_v59 = vld [vmem:[#allocation3 + $0x188] sm:$0xff] }
 0x343   : > { %1699 = vst [vmem:[%s2898_s27] sm:$0xff] %v1698_v29 }
 0x345   : > { %v953_v26 = vpop.permute.xlu2 %952  ;;  %v1463_v28 = vld [vmem:[#allocation3 + $0x100] sm:$0xff] }
 0x346   : > { %999 = vst.msk [vmem:[#allocation3 + $0x190] sm:$0xff] %vm526_vm2, %v953_v26  ;;  %1494 = vmatpush.msra.mxu3 %v1463_v28 }
 0x347   : > { %1495 = vmatmul.f32.vlgmr.msra.gmra.mxu3 %v1460_v19 }
 0x348   : > { %1689 = vmatpush.msrb.mxu3 %v1669_v51 }
 0x34a   : > { %1690 = vmatpush.msrb.mxu3 %v1668_v40 }
 0x34c   : > { %1691 = vmatpush.msrb.mxu3 %v1667_v42 }
 0x34d   : > { %v949_v32 = vpop.permute.xlu2 %948  ;;  %v1615_v11 = vld [vmem:[#allocation3 + $0x190] sm:$0xff] }
 0x34e   : > { %997 = vst.msk [vmem:[#allocation3 + $0x180] sm:$0xff] %vm526_vm2, %v949_v32  ;;  %1642 = vmatpush.msrb.mxu1 %v1615_v11  ;;  %1692 = vmatpush.msrb.mxu3 %v1666_v43 }
 0x350   : > { %1643 = vmatpush.msrb.mxu1 %v1614_v59 }
 0x355   : > { %v1613_v34 = vld [vmem:[#allocation3 + $0x180] sm:$0xff] }
 0x356   : > { %1644 = vmatpush.msrb.mxu1 %v1613_v34 }
 0x357   : > { %1645 = vmatmul.f32.vlgmr.msrb.gmra.mxu1 %v1610_v23 }
 0x365   : > { %v1196_v35 = vpop.f32.mrf.mxu3 }
 0x3bc   : > { %v1346_v36 = vpop.f32.mrf.mxu3 }
 0x3bd   : > { %1650 = vrot.lane.b32.xlu0 %v1346_v36, %s2167_s18 }
 0x3ca   : > { %v1496_v38 = vpop.f32.mrf.mxu3 }
 0x3cb   : > { %1654 = vrot.lane.b32.xlu2 %v1496_v38, %s2168_s1  ;;  %s1952_s1 = sshll.u32 %s2150_s12, 3  ;;  %s2068_s12 = scalar_lea.hbm %s2985_s9, 16 }
 0x3cc   : > { %s1732_s23 = scalar_lea.hbm %s2985_s9, %s1952_s1 }
 0x3cd   : > { %s1736_s25 = sshll.u32 %s1732_s23, 4  ;;  %s1737_s25 = int_to_ptr.hbm [resolvable:$true] %s1736_s25 }
 0x3ce   : > { %s2062_s28 = sshra.s32 %s1737_s25, 4  ;;  %s2063_s28 = int_to_ptr.hbm [resolvable:$true] %s2062_s28 }
 0x3cf   : > { %s2064_s29 = scalar_lea.hbm %s2063_s28, 8  ;;  %p2069_p1 = scmp.lt.s32.totalorder %s2063_s28, %s2985_s9 }
 0x3d0   : > { %p2065_p12 = scmp.ne.s32.totalorder %s2063_s28, %s2064_s29  ;;  %p2070_p2 = scmp.lt.s32.totalorder %s2068_s12, %s2064_s29 }
 0x3d2   : > { %p2066_p13 = pnand %p2065_p12, %p2260_p4  ;;  %p2071_p3 = por %p2070_p2, %p2069_p1 }
 0x3d4   : > { %v1646_v33 = vpop.f32.mrf.mxu1  ;;  %p2067_p0 = pneg %p2066_p13 }
 0x3d5   : > { %1658 = vrot.lane.b32.xlu1 %v1646_v33, %s2169_s4 }
 0x3d6   : > { %p2072_p5 = pnand %p2071_p3, %p2067_p0 }
 0x425   : > { %v1655_v46 = vpop.permute.xlu2 %1654 }
 0x42f   : > { %v1651_v25 = vpop.permute.xlu0 %1650 }
 0x430   : > { %v1661_v44 = vsel %vm526_vm2, %v1196_v35, %v1651_v25 }
 0x431   : > { %v1663_v48 = vsel %vm412_vm0, %v1661_v44, %v1655_v46 }
 0x447   : > { %v1659_v56 = vpop.permute.xlu1 %1658 }
 0x448   : > { %v1665_v50 = vsel %vm1664_vm7, %v1663_v48, %v1659_v56 }
 0x449   : > { %1949 = vmatmul.msk.f32.vlgmr.msrb.gmra.mxu3 %vm1022_vm1, %v1665_v50 }
 0x44a   : > { %2075 = shalt.err (!%p2072_p5)
}
 0x44b   : > { %1960 = dma.vmem_to_hbm [thread:$0]  (%p2260_p4), %s1735_s24, 128, %s1737_s25, %s1706_s26   ;;  %v2031_v52 = vld [vmem:[%s2983_s7] ss:$0 sm:$0xff] }
 0x44c   : > { %s1717_s20 = scalar_lea.hbm %s2984_s8, %s1952_s1  ;;  %s3001_s0 = sshll.u32 %s2891_s15, 3 }
 0x44d   : > { %s366_s2 = scalar_lea.vmem [#allocation4], %s3001_s0  ;;  %s1721_s29 = sshll.u32 %s1717_s20, 4  ;;  %s1722_s29 = int_to_ptr.hbm [resolvable:$true] %s1721_s29 }
 0x44e   : > { %s1719_s28 = sshll.u32 %s366_s2, 4  ;;  %s1701_s24 = scalar_lea.sflag [#allocation5], %s2891_s15  ;;  %s1720_s28 = int_to_ptr.vmem [resolvable:$true] %s1719_s28 }
 0x44f   : > { %s2090_s25 = sshra.s32 %s1722_s29, 4  ;;  %s2096_s12 = scalar_lea.hbm %s2984_s8, 16  ;;  %s2091_s25 = int_to_ptr.hbm [resolvable:$true] %s2090_s25 }
 0x450   : > { %s2092_s26 = scalar_lea.hbm %s2091_s25, 8  ;;  %p2097_p10 = scmp.lt.s32.totalorder %s2091_s25, %s2984_s8 }
 0x451   : > { %p2093_p6 = scmp.ne.s32.totalorder %s2091_s25, %s2092_s26  ;;  %p2098_p11 = scmp.lt.s32.totalorder %s2096_s12, %s2092_s26 }
 0x453   : > { %p2094_p7 = pnand %p2093_p6, %p2260_p4  ;;  %p2099_p12 = por %p2098_p11, %p2097_p10 }
 0x455   : > { %p2095_p9 = pneg %p2094_p7 }
 0x457   : > { %p2100_p13 = pnand %p2099_p12, %p2095_p9 }
 0x4cc   : > { %v1694_v54 = vpop.f32.mrf.mxu3 }
 0x4cd   : > { %v1695_v55 = vadd.f32 %v2031_v52, %v1694_v54 }
 0x4cf   : > { %1697 = vst.msk [vmem:[%s366_s2] sm:$0xff] %vm1022_vm1, %v1695_v55 }
 0x4d0   : > { %2103 = shalt.err (!%p2100_p13)
}
 0x4d1   : > { %1959 = dma.vmem_to_hbm [thread:$0]  (%p2260_p4), %s1720_s28, 128, %s1722_s29, %s1701_s24  }
 0x4d2 PF: > { %p1970_p0 = scmp.ge.s32.totalorder %s2158_s14, 2  ;;  %s1748_s15 = sand.u32 1, %s2138_s30  }
 0x4d3   : > { %s1749_s20 = scalar_lea.sflag [#allocation5], %s1748_s15 }
 0x4d4   : > { %p1964_p1 = pnand %p1970_p0, %p2267_p8 }
 0x4d6   : > { %p1965_p2 = pneg %p1964_p1 }
 0x4d8   : > { %2129 = dma.done.wait (%p1965_p2), %s1749_s20, 128  }
 0x4d9   : > { %2131 = vsyncadd (%p1965_p2), %s1749_s20, 4294967168  ;;  %s1759_s16 = scalar_lea.sflag [#allocation7], %s1748_s15 }
 0x4da   : > { %2133 = dma.done.wait (%p1965_p2), %s1759_s16, 128  }
 0x4db   : > { %2135 = vsyncadd (%p1965_p2), %s1759_s16, 4294967168  ;;  %s26_s14 = sadd.s32 1, %s2158_s14   ;;  %s3002_s30 = smov %s2142_s10 }
 0x4dc   : > { %p23_p3 = scmp.ge.s32.totalorder %s26_s14, 4   ;;  %s3003_s10 = smov %s2146_s11 }
 0x4dd   : > { %s3004_s11 = smov %s2273_s22  ;;  %s3005_s12 = smov %s2154_s13 }
 0x4de   : > { %s3006_s13 = smov %s3008_s17  ;;  %25 = sbr.rel (!%p23_p3) target bundleno = 11 (0xb), region = 123 }
 0x4e3   :  { %1765 = vsyncpa [#allocation5], 1 }
 0x4e4   :  { %1767 = vsyncpa [#allocation5 + $0x1], 1 }
 0x4e5   :  { %1768 = vsyncpa [#allocation7], 1 }
 0x4e6   :  { %1770 = vsyncpa [#allocation7 + $0x1], 1 }

</bundles_post_ra>
